<compile_context>
chip_gen: v7x
topology: tpu7x:2x2x1
jax: 0.10.0
libtpu: 0.0.40
codegen_flags: <defaults>
</compile_context>

<pallas_src>
import functools
import math

import jax
import jax.numpy as jnp
from jax import lax
from jax.experimental import pallas as pl
from jax.experimental.pallas import tpu as pltpu


# ---------------------------------------------------------------------------
# Helpers
# ---------------------------------------------------------------------------
def _sublane_align(dtype):
    """Sublane alignment: 8 rows for f32, 16 for bf16, 32 for int8/fp8."""
    return max(8, 32 // jnp.dtype(dtype).itemsize)


def _pick_tile(dim, cap, align):
    """Largest multiple of `align` <= cap that divides dim; else the full dim.

    The full-dim fallback keeps the (8, 128) BlockSpec rule satisfied
    (block == array extent); typical transformer shapes never hit the
    "huge non-divisible dim" hazard noted in review.
    """
    if dim <= cap:
        return dim
    t = (cap // align) * align
    while t >= align:
        if dim % t == 0:
            return t
        t -= align
    return dim


def _vmem_limit_bytes():
    """Scoped-VMEM budget: ~3/4 of physical (≈96 MiB on v5e/v6e, ≈48 MiB on v7x)."""
    try:
        cap = int(getattr(pltpu.get_tpu_info(), "vmem_capacity_bytes", 128 << 20))
    except Exception:  # no hardware info available (e.g. interpret mode)
        cap = 128 << 20
    return max(32 << 20, min((cap * 3) // 4, 100 << 20))


# ---------------------------------------------------------------------------
# Fused QKV projection: K-tiled GEMM + bias
# ---------------------------------------------------------------------------
def _linear_kernel(x_ref, w_ref, b_ref, o_ref, acc_ref):
    # x_ref: (TM, TK)  w_ref: (TK, TN)  b_ref: (1, TN)  o_ref/acc_ref: (TM, TN)
    k = pl.program_id(2)

    @pl.when(k == 0)
    def _():
        acc_ref[...] = jnp.zeros_like(acc_ref)

    acc_ref[...] += jnp.dot(x_ref[...], w_ref[...],
                            preferred_element_type=jnp.float32)        # MXU, f32 acc

    @pl.when(k == pl.num_programs(2) - 1)
    def _():
        o_ref[...] = (acc_ref[...] + b_ref[...].astype(jnp.float32)).astype(o_ref.dtype)


def _tiled_linear(x2d, w_t, bias):
    """(M, K) @ (K, N) + (N,) -> (M, N) with a tiled contraction axis."""
    M, K = x2d.shape
    N = w_t.shape[1]
    sub = _sublane_align(x2d.dtype)
    tm = _pick_tile(M, 256, sub)     # sublane axis of x / out
    tn = _pick_tile(N, 512, 128)     # lane axis of w / out -> lane-dense stores
    tk = _pick_tile(K, 512, 128)     # contraction axis: bounded VMEM per step
    b2d = bias.reshape(1, N)
    itemsize = jnp.dtype(x2d.dtype).itemsize
    cost = pl.CostEstimate(
        flops=2 * M * K * N,
        transcendentals=0,
        bytes_accessed=(M * K * (N // tn) + K * N * (M // tm) + M * N + N) * itemsize,
    )
    return pl.pallas_call(
        _linear_kernel,
        out_shape=jax.ShapeDtypeStruct((M, N), x2d.dtype),
        grid_spec=pltpu.PrefetchScalarGridSpec(
            num_scalar_prefetch=0,
            grid=(M // tm, N // tn, K // tk),
            in_specs=[
                pl.BlockSpec((tm, tk), lambda i, j, k: (i, k)),
                pl.BlockSpec((tk, tn), lambda i, j, k: (k, j)),
                pl.BlockSpec((1, tn), lambda i, j, k: (0, j)),   # bias: resident over i/k
            ],
            out_specs=pl.BlockSpec((tm, tn), lambda i, j, k: (i, j)),
            scratch_shapes=[pltpu.VMEM((tm, tn), jnp.float32)],
        ),
        compiler_params=pltpu.CompilerParams(
            dimension_semantics=("parallel", "parallel", "arbitrary"),
            vmem_limit_bytes=_vmem_limit_bytes(),
        ),
        cost_estimate=cost,
    )(x2d, w_t, b2d)


# ---------------------------------------------------------------------------
# Flash-style attention reading directly from the fused QKV projection
# ---------------------------------------------------------------------------
def _attn_kernel(q_ref, k_ref, v_ref, o_ref, m_sc, l_sc, acc_sc, *,
                 scale, heads, head_dim, q_off, k_off, v_off):
    # q_ref: (tq, Wq)  k_ref/v_ref: (tk, Wk)  o_ref: (tq, heads*head_dim)
    kv = pl.program_id(3)

    @pl.when(kv == 0)
    def _():
        m_sc[...] = jnp.full_like(m_sc, -jnp.inf)
        l_sc[...] = jnp.zeros_like(l_sc)
        acc_sc[...] = jnp.zeros_like(acc_sc)

    # Static (unrolled) loop over the heads packed in this block; all dots are
    # plain 2-D MXU matmuls (no degenerate batch dim).
    for g in range(heads):
        q = q_ref[:, q_off + g * head_dim: q_off + (g + 1) * head_dim]   # (tq, hd)
        k = k_ref[:, k_off + g * head_dim: k_off + (g + 1) * head_dim]   # (tk, hd)
        v = v_ref[:, v_off + g * head_dim: v_off + (g + 1) * head_dim]   # (tk, hd)

        s = lax.dot_general(q, k, (((1,), (1,)), ((), ())),
                            preferred_element_type=jnp.float32) * scale  # (tq, tk)

        m_prev = m_sc[g]                                                 # (tq, 1)
        m_new = jnp.maximum(m_prev, s.max(axis=-1, keepdims=True))
        alpha = jnp.exp(m_prev - m_new)
        p = jnp.exp(s - m_new)
        l_sc[g] = alpha * l_sc[g] + p.sum(axis=-1, keepdims=True)
        acc_sc[g] = alpha * acc_sc[g] + lax.dot_general(
            p.astype(v.dtype), v, (((1,), (0,)), ((), ())),
            preferred_element_type=jnp.float32)                          # (tq, hd)
        m_sc[g] = m_new

    @pl.when(kv == pl.num_programs(3) - 1)
    def _():
        # exact divide (not approx reciprocal) for tight parity with the reference
        parts = [(acc_sc[g] / l_sc[g]).astype(o_ref.dtype) for g in range(heads)]
        o_ref[...] = parts[0] if heads == 1 else jnp.concatenate(parts, axis=-1)


def _fused_attention(qkv, *, num_heads, head_dim, out_dtype):
    """qkv: (B, S, 3H) fused projection -> context (B, S, H) (no transposes)."""
    B, S, three_h = qkv.shape
    H = three_h // 3
    hd = head_dim
    nh = num_heads
    scale = 1.0 / math.sqrt(hd)

    # Pack G heads per grid step so the block lane width (G*hd) is a multiple
    # of 128; fall back to all heads per step with full-lane-extent blocks.
    G = None
    for g in range(1, nh + 1):
        if nh % g == 0 and (g * hd) % 128 == 0:
            G = g
            break
    grouped = G is not None

    sub = _sublane_align(qkv.dtype)
    tq = _pick_tile(S, 128, sub)       # q rows: keep s/p vreg pressure contained
    tk = _pick_tile(S, 256, 128)       # kv rows = lane dim of s/p: 128-aligned

    if grouped:
        n_groups = nh // G
        heads = G
        gw = G * hd
        q_spec = pl.BlockSpec((pl.Squeezed(), tq, gw),
                              lambda b, g, qi, ki: (b, qi, g))
        k_spec = pl.BlockSpec((pl.Squeezed(), tk, gw),
                              lambda b, g, qi, ki: (b, ki, n_groups + g))
        v_spec = pl.BlockSpec((pl.Squeezed(), tk, gw),
                              lambda b, g, qi, ki: (b, ki, 2 * n_groups + g))
        o_spec = pl.BlockSpec((pl.Squeezed(), tq, gw),
                              lambda b, g, qi, ki: (b, qi, g))
        q_off = k_off = v_off = 0
    else:
        n_groups = 1
        heads = nh
        q_spec = pl.BlockSpec((pl.Squeezed(), tq, three_h),
                              lambda b, g, qi, ki: (b, qi, 0))
        k_spec = pl.BlockSpec((pl.Squeezed(), tk, three_h),
                              lambda b, g, qi, ki: (b, ki, 0))
        v_spec = pl.BlockSpec((pl.Squeezed(), tk, three_h),
                              lambda b, g, qi, ki: (b, ki, 0))
        o_spec = pl.BlockSpec((pl.Squeezed(), tq, H),
                              lambda b, g, qi, ki: (b, qi, 0))
        q_off, k_off, v_off = 0, H, 2 * H

    itemsize = jnp.dtype(qkv.dtype).itemsize
    cost = pl.CostEstimate(
        flops=4 * B * nh * S * S * hd,
        transcendentals=B * nh * S * S,
        bytes_accessed=(2 * B * S * H + 2 * B * S * H * (S // tq)) * itemsize,
    )
    kernel = functools.partial(
        _attn_kernel, scale=scale, heads=heads, head_dim=hd,
        q_off=q_off, k_off=k_off, v_off=v_off)

    return pl.pallas_call(
        kernel,
        out_shape=jax.ShapeDtypeStruct((B, S, H), out_dtype),
        grid_spec=pltpu.PrefetchScalarGridSpec(
            num_scalar_prefetch=0,
            grid=(B, n_groups, S // tq, S // tk),
            in_specs=[q_spec, k_spec, v_spec],
            out_specs=o_spec,
            scratch_shapes=[
                pltpu.VMEM((heads, tq, 1), jnp.float32),    # running max
                pltpu.VMEM((heads, tq, 1), jnp.float32),    # running denom
                pltpu.VMEM((heads, tq, hd), jnp.float32),   # f32 output accumulator
            ],
        ),
        compiler_params=pltpu.CompilerParams(
            dimension_semantics=("parallel", "parallel", "parallel", "arbitrary"),
            vmem_limit_bytes=_vmem_limit_bytes(),
        ),
        cost_estimate=cost,
    )(qkv, qkv, qkv)


# ---------------------------------------------------------------------------
# Full SelfAttention forward
# ---------------------------------------------------------------------------
@functools.partial(jax.jit, static_argnames=("num_heads",))
def self_attention(hidden_states, w_qkv_t, b_qkv, *, num_heads):
    """hidden_states: (B, S, H); w_qkv_t: (H, 3H) = [Wq^T|Wk^T|Wv^T] fused once
    outside jit; b_qkv: (3H,) = [bq|bk|bv]; returns context (B, S, H)."""
    # TODO(synk): attention_mask / head_mask (both None by default) not supported.
    # TODO(synk): nn.Dropout on attention probs is identity here (inference path).
    # TODO(synk): output_attentions=True (returning raw scores) not implemented.
    B, S, H = hidden_states.shape
    hd = H // num_heads
    x2d = hidden_states.reshape(B * S, H)
    qkv = _tiled_linear(x2d, w_qkv_t, b_qkv)      # (B*S, 3H) fused projection
    qkv = qkv.reshape(B, S, 3 * H)                # contiguous (free) reshape
    return _fused_attention(qkv, num_heads=num_heads, head_dim=hd,
                            out_dtype=hidden_states.dtype)


# ---------------------------------------------------------------------------
# Params + reference + demo
# ---------------------------------------------------------------------------
def init_params(key, hidden_size, dtype=jnp.float32):
    """nn.Linear-style init; weights stored pre-transposed as (H, H)."""
    keys = jax.random.split(key, 6)
    bound = 1.0 / math.sqrt(hidden_size)

    def lin(kw, kb):
        w_t = jax.random.uniform(kw, (hidden_size, hidden_size), dtype, -bound, bound)
        b = jax.random.uniform(kb, (hidden_size,), dtype, -bound, bound)
        return w_t, b

    wq_t, bq = lin(keys[0], keys[1])
    wk_t, bk = lin(keys[2], keys[3])
    wv_t, bv = lin(keys[4], keys[5])
    return wq_t, bq, wk_t, bk, wv_t, bv


def fuse_qkv_params(wq_t, bq, wk_t, bk, wv_t, bv):
    """Pre-concatenate the QKV params ONCE (outside the jitted forward)."""
    return jnp.concatenate([wq_t, wk_t, wv_t], axis=1), jnp.concatenate([bq, bk, bv])


def _reference(x, w_qkv_t, b_qkv, num_heads):
    B, S, H = x.shape
    hd = H // num_heads
    wq_t, wk_t, wv_t = w_qkv_t[:, :H], w_qkv_t[:, H:2 * H], w_qkv_t[:, 2 * H:]
    bq, bk, bv = b_qkv[:H], b_qkv[H:2 * H], b_qkv[2 * H:]
    q = x @ wq_t + bq
    k = x @ wk_t + bk
    v = x @ wv_t + bv

    def heads(t):
        return t.reshape(B, S, num_heads, hd).transpose(0, 2, 1, 3)

    qh, kh, vh = heads(q), heads(k), heads(v)
    s = jnp.einsum("bhqd,bhkd->bhqk", qh, kh) / math.sqrt(hd)
    p = jax.nn.softmax(s, axis=-1)
    ctx = jnp.einsum("bhqk,bhkd->bhqd", p, vh)
    return ctx.transpose(0, 2, 1, 3).reshape(B, S, H)


def _run_case(key, B, S, H, NH):
    k_x, k_p = jax.random.split(key)
    x = jax.random.normal(k_x, (B, S, H), dtype=jnp.float32)
    params = init_params(k_p, H)
    w_qkv_t, b_qkv = fuse_qkv_params(*params)      # fused once, outside jit
    out = self_attention(x, w_qkv_t, b_qkv, num_heads=NH)
    out = jax.block_until_ready(out)
    ref = _reference(x, w_qkv_t, b_qkv, NH)
    assert out.shape == (B, S, H)
    assert jnp.allclose(out, ref, atol=2e-5, rtol=2e-5), \
        float(jnp.max(jnp.abs(out - ref)))


if __name__ == "__main__":
    key = jax.random.PRNGKey(0)
    k1, k2 = jax.random.split(key)

    # Small-hidden case (ungrouped fallback path): B=2, S=8, hidden=32, heads=4.
    _run_case(k1, B=2, S=8, H=32, NH=4)
    # Lane-dense head-grouped path (G*hd == 128): B=1, S=16, hidden=128, heads=2.
    _run_case(k2, B=1, S=16, H=128, NH=2)

    print("KERNEL_OK")
</pallas_src>

<mosaic_0001>
module attributes {stable_mosaic.version = 11 : i64} {
  func.func @_linear_kernel(%arg0: i32, %arg1: i32, %arg2: i32, %arg3: memref<16x32xf32, #tpu.memory_space<vmem>>, %arg4: memref<32x96xf32, #tpu.memory_space<vmem>>, %arg5: memref<1x96xf32, #tpu.memory_space<vmem>>, %arg6: memref<16x96xf32, #tpu.memory_space<vmem>>, %arg7: memref<16x96xf32, #tpu.memory_space<vmem>>) attributes {dimension_semantics = [#tpu.dimension_semantics<parallel>, #tpu.dimension_semantics<parallel>, #tpu.dimension_semantics<arbitrary>], iteration_bounds = array<i64: 1, 1, 1>, scalar_prefetch = 0 : i64, scratch_operands = 1 : i64, tpu.core_type = #tpu.core_type<tc>, window_params = [{transform_indices = @transform_0, window_bounds = array<i64: 16, 32>}, {transform_indices = @transform_1, window_bounds = array<i64: 32, 96>}, {transform_indices = @transform_2, window_bounds = array<i64: 1, 96>}, {transform_indices = @transform_3, window_bounds = array<i64: 16, 96>}]} {
    %c0_i32 = arith.constant 0 : i32
    %0 = arith.cmpi eq, %arg2, %c0_i32 : i32
    %1 = arith.extui %0 : i1 to i32
    %c0_i32_0 = arith.constant 0 : i32
    %2 = arith.cmpi ne, %1, %c0_i32_0 : i32
    scf.if %2 {
      %cst_10 = arith.constant 0.000000e+00 : f32
      %12 = vector.broadcast %cst_10 : f32 to vector<16x96xf32>
      %c0_11 = arith.constant 0 : index
      %c0_12 = arith.constant 0 : index
      %13 = vector.load %arg7[%c0_11, %c0_12] : memref<16x96xf32, #tpu.memory_space<vmem>>, vector<16x96xf32>
      tpu.vector_store %arg7[%c0_11, %c0_12], %12 {strides = array<i32>} : memref<16x96xf32, #tpu.memory_space<vmem>>, vector<16x96xf32>,
    } else {
    }
    %c0 = arith.constant 0 : index
    %c0_1 = arith.constant 0 : index
    %3 = vector.load %arg7[%c0, %c0_1] : memref<16x96xf32, #tpu.memory_space<vmem>>, vector<16x96xf32>
    %c0_2 = arith.constant 0 : index
    %c0_3 = arith.constant 0 : index
    %4 = vector.load %arg3[%c0_2, %c0_3] : memref<16x32xf32, #tpu.memory_space<vmem>>, vector<16x32xf32>
    %c0_4 = arith.constant 0 : index
    %c0_5 = arith.constant 0 : index
    %5 = vector.load %arg4[%c0_4, %c0_5] : memref<32x96xf32, #tpu.memory_space<vmem>>, vector<32x96xf32>
    %cst = arith.constant dense<0.000000e+00> : vector<16x96xf32>
    %6 = tpu.matmul %4, %5, %cst {dimension_numbers = #tpu.dot_dimension_numbers<[1], [0], [0], [1], [0, 0, 1, 1], [], []>} : vector<16x32xf32>, vector<32x96xf32>, vector<16x96xf32> -> vector<16x96xf32>
    %7 = arith.addf %3, %6 : vector<16x96xf32>
    %c0_6 = arith.constant 0 : index
    %c0_7 = arith.constant 0 : index
    %8 = vector.load %arg7[%c0_6, %c0_7] : memref<16x96xf32, #tpu.memory_space<vmem>>, vector<16x96xf32>
    tpu.vector_store %arg7[%c0_6, %c0_7], %7 {strides = array<i32>} : memref<16x96xf32, #tpu.memory_space<vmem>>, vector<16x96xf32>,
    %c0_i32_8 = arith.constant 0 : i32
    %9 = arith.cmpi eq, %arg2, %c0_i32_8 : i32
    %10 = arith.extui %9 : i1 to i32
    %c0_i32_9 = arith.constant 0 : i32
    %11 = arith.cmpi ne, %10, %c0_i32_9 : i32
    scf.if %11 {
      %c0_10 = arith.constant 0 : index
      %c0_11 = arith.constant 0 : index
      %12 = vector.load %arg7[%c0_10, %c0_11] : memref<16x96xf32, #tpu.memory_space<vmem>>, vector<16x96xf32>
      %c0_12 = arith.constant 0 : index
      %c0_13 = arith.constant 0 : index
      %13 = vector.load %arg5[%c0_12, %c0_13] : memref<1x96xf32, #tpu.memory_space<vmem>>, vector<1x96xf32>
      %14 = vector.broadcast %13 : vector<1x96xf32> to vector<16x96xf32>
      %15 = arith.addf %12, %14 : vector<16x96xf32>
      %c0_14 = arith.constant 0 : index
      %c0_15 = arith.constant 0 : index
      %16 = vector.load %arg6[%c0_14, %c0_15] : memref<16x96xf32, #tpu.memory_space<vmem>>, vector<16x96xf32>
      tpu.vector_store %arg6[%c0_14, %c0_15], %15 {strides = array<i32>} : memref<16x96xf32, #tpu.memory_space<vmem>>, vector<16x96xf32>,
    } else {
    }
    return
  }
  func.func @transform_0(%arg0: i32, %arg1: i32, %arg2: i32) -> (i32, i32) {
    %c0_i32 = arith.constant 0 : i32
    return %arg0, %arg2 : i32, i32
  }
  func.func @transform_1(%arg0: i32, %arg1: i32, %arg2: i32) -> (i32, i32) {
    %c0_i32 = arith.constant 0 : i32
    return %arg2, %arg1 : i32, i32
  }
  func.func @transform_2(%arg0: i32, %arg1: i32, %arg2: i32) -> (i32, i32) {
    %c0_i32 = arith.constant 0 : i32
    %c0_i32_0 = arith.constant 0 : i32
    return %c0_i32, %arg1 : i32, i32
  }
  func.func @transform_3(%arg0: i32, %arg1: i32, %arg2: i32) -> (i32, i32) {
    %c0_i32 = arith.constant 0 : i32
    return %arg0, %arg1 : i32, i32
  }
}

module attributes {stable_mosaic.version = 11 : i64} {
  func.func @_attn_kernel(%arg0: i32, %arg1: i32, %arg2: i32, %arg3: i32, %arg4: memref<1x8x96xf32, #tpu.memory_space<vmem>>, %arg5: memref<1x8x96xf32, #tpu.memory_space<vmem>>, %arg6: memref<1x8x96xf32, #tpu.memory_space<vmem>>, %arg7: memref<1x8x32xf32, #tpu.memory_space<vmem>>, %arg8: memref<4x8x1xf32, #tpu.memory_space<vmem>>, %arg9: memref<4x8x1xf32, #tpu.memory_space<vmem>>, %arg10: memref<4x8x8xf32, #tpu.memory_space<vmem>>) attributes {dimension_semantics = [#tpu.dimension_semantics<parallel>, #tpu.dimension_semantics<parallel>, #tpu.dimension_semantics<parallel>, #tpu.dimension_semantics<arbitrary>], iteration_bounds = array<i64: 2, 1, 1, 1>, scalar_prefetch = 0 : i64, scratch_operands = 3 : i64, tpu.core_type = #tpu.core_type<tc>, window_params = [{transform_indices = @transform_0, window_bounds = array<i64: 1, 8, 96>}, {transform_indices = @transform_1, window_bounds = array<i64: 1, 8, 96>}, {transform_indices = @transform_2, window_bounds = array<i64: 1, 8, 96>}, {transform_indices = @transform_3, window_bounds = array<i64: 1, 8, 32>}]} {
    %c0_i32 = arith.constant 0 : i32
    %0 = arith.cmpi eq, %arg3, %c0_i32 : i32
    %1 = arith.extui %0 : i1 to i32
    %c0_i32_0 = arith.constant 0 : i32
    %2 = arith.cmpi ne, %1, %c0_i32_0 : i32
    scf.if %2 {
      %cst_115 = arith.constant 0xFF800000 : f32
      %166 = vector.broadcast %cst_115 : f32 to vector<4x8x1xf32>
      %c0_116 = arith.constant 0 : index
      %c0_117 = arith.constant 0 : index
      %c0_118 = arith.constant 0 : index
      %167 = vector.load %arg8[%c0_116, %c0_117, %c0_118] : memref<4x8x1xf32, #tpu.memory_space<vmem>>, vector<4x8x1xf32>
      tpu.vector_store %arg8[%c0_116, %c0_117, %c0_118], %166 {strides = array<i32>} : memref<4x8x1xf32, #tpu.memory_space<vmem>>, vector<4x8x1xf32>,
      %cst_119 = arith.constant 0.000000e+00 : f32
      %168 = vector.broadcast %cst_119 : f32 to vector<4x8x1xf32>
      %c0_120 = arith.constant 0 : index
      %c0_121 = arith.constant 0 : index
      %c0_122 = arith.constant 0 : index
      %169 = vector.load %arg9[%c0_120, %c0_121, %c0_122] : memref<4x8x1xf32, #tpu.memory_space<vmem>>, vector<4x8x1xf32>
      tpu.vector_store %arg9[%c0_120, %c0_121, %c0_122], %168 {strides = array<i32>} : memref<4x8x1xf32, #tpu.memory_space<vmem>>, vector<4x8x1xf32>,
      %cst_123 = arith.constant 0.000000e+00 : f32
      %170 = vector.broadcast %cst_123 : f32 to vector<4x8x8xf32>
      %c0_124 = arith.constant 0 : index
      %c0_125 = arith.constant 0 : index
      %c0_126 = arith.constant 0 : index
      %171 = vector.load %arg10[%c0_124, %c0_125, %c0_126] : memref<4x8x8xf32, #tpu.memory_space<vmem>>, vector<4x8x8xf32>
      tpu.vector_store %arg10[%c0_124, %c0_125, %c0_126], %170 {strides = array<i32>} : memref<4x8x8xf32, #tpu.memory_space<vmem>>, vector<4x8x8xf32>,
    } else {
    }
    %c0 = arith.constant 0 : index
    %c0_1 = arith.constant 0 : index
    %c0_2 = arith.constant 0 : index
    %3 = vector.load %arg4[%c0, %c0_1, %c0_2] : memref<1x8x96xf32, #tpu.memory_space<vmem>>, vector<1x8x8xf32>
    %4 = vector.shape_cast %3 : vector<1x8x8xf32> to vector<8x8xf32>
    %c0_3 = arith.constant 0 : index
    %c0_4 = arith.constant 0 : index
    %c32 = arith.constant 32 : index
    %5 = vector.load %arg5[%c0_3, %c0_4, %c32] : memref<1x8x96xf32, #tpu.memory_space<vmem>>, vector<1x8x8xf32>
    %6 = vector.shape_cast %5 : vector<1x8x8xf32> to vector<8x8xf32>
    %c0_5 = arith.constant 0 : index
    %c0_6 = arith.constant 0 : index
    %c64 = arith.constant 64 : index
    %7 = vector.load %arg6[%c0_5, %c0_6, %c64] : memref<1x8x96xf32, #tpu.memory_space<vmem>>, vector<1x8x8xf32>
    %8 = vector.shape_cast %7 : vector<1x8x8xf32> to vector<8x8xf32>
    %cst = arith.constant dense<0.000000e+00> : vector<8x8xf32>
    %9 = tpu.matmul %4, %6, %cst {dimension_numbers = #tpu.dot_dimension_numbers<[1], [1], [0], [0], [0, 0, 1, 0], [], []>} : vector<8x8xf32>, vector<8x8xf32>, vector<8x8xf32> -> vector<8x8xf32>
    %cst_7 = arith.constant 0.353553385 : f32
    %10 = vector.broadcast %cst_7 : f32 to vector<8x8xf32>
    %11 = arith.mulf %9, %10 : vector<8x8xf32>
    %c0_8 = arith.constant 0 : index
    %c0_9 = arith.constant 0 : index
    %c0_10 = arith.constant 0 : index
    %12 = vector.load %arg8[%c0_8, %c0_9, %c0_10] : memref<4x8x1xf32, #tpu.memory_space<vmem>>, vector<1x8x1xf32>
    %13 = vector.shape_cast %12 : vector<1x8x1xf32> to vector<8x1xf32>
    %cst_11 = arith.constant dense<0xFF800000> : vector<8xf32>
    %14 = vector.multi_reduction <maximumf>, %11, %cst_11 [1] : vector<8x8xf32> to vector<8xf32>
    %15 = vector.shape_cast %14 : vector<8xf32> to vector<8x1xf32>
    %16 = arith.maximumf %13, %15 : vector<8x1xf32>
    %17 = arith.subf %13, %16 : vector<8x1xf32>
    %18 = math.exp %17 : vector<8x1xf32>
    %19 = vector.broadcast %16 : vector<8x1xf32> to vector<8x8xf32>
    %20 = arith.subf %11, %19 : vector<8x8xf32>
    %21 = math.exp %20 : vector<8x8xf32>
    %c0_12 = arith.constant 0 : index
    %c0_13 = arith.constant 0 : index
    %c0_14 = arith.constant 0 : index
    %22 = vector.load %arg9[%c0_12, %c0_13, %c0_14] : memref<4x8x1xf32, #tpu.memory_space<vmem>>, vector<1x8x1xf32>
    %23 = vector.shape_cast %22 : vector<1x8x1xf32> to vector<8x1xf32>
    %24 = arith.mulf %18, %23 : vector<8x1xf32>
    %cst_15 = arith.constant dense<0.000000e+00> : vector<8xf32>
    %25 = vector.multi_reduction <add>, %21, %cst_15 [1] : vector<8x8xf32> to vector<8xf32>
    %26 = vector.shape_cast %25 : vector<8xf32> to vector<8x1xf32>
    %27 = arith.addf %24, %26 : vector<8x1xf32>
    %c0_16 = arith.constant 0 : index
    %c0_17 = arith.constant 0 : index
    %c0_18 = arith.constant 0 : index
    %28 = vector.load %arg9[%c0_16, %c0_17, %c0_18] : memref<4x8x1xf32, #tpu.memory_space<vmem>>, vector<1x8x1xf32>
    %29 = vector.shape_cast %28 : vector<1x8x1xf32> to vector<8x1xf32>
    %30 = vector.shape_cast %27 : vector<8x1xf32> to vector<1x8x1xf32>
    tpu.vector_store %arg9[%c0_16, %c0_17, %c0_18], %30 {strides = array<i32>} : memref<4x8x1xf32, #tpu.memory_space<vmem>>, vector<1x8x1xf32>,
    %c0_19 = arith.constant 0 : index
    %c0_20 = arith.constant 0 : index
    %c0_21 = arith.constant 0 : index
    %31 = vector.load %arg10[%c0_19, %c0_20, %c0_21] : memref<4x8x8xf32, #tpu.memory_space<vmem>>, vector<1x8x8xf32>
    %32 = vector.shape_cast %31 : vector<1x8x8xf32> to vector<8x8xf32>
    %33 = vector.broadcast %18 : vector<8x1xf32> to vector<8x8xf32>
    %34 = arith.mulf %33, %32 : vector<8x8xf32>
    %cst_22 = arith.constant dense<0.000000e+00> : vector<8x8xf32>
    %35 = tpu.matmul %21, %8, %cst_22 {dimension_numbers = #tpu.dot_dimension_numbers<[1], [0], [0], [1], [0, 0, 1, 1], [], []>} : vector<8x8xf32>, vector<8x8xf32>, vector<8x8xf32> -> vector<8x8xf32>
    %36 = arith.addf %34, %35 : vector<8x8xf32>
    %c0_23 = arith.constant 0 : index
    %c0_24 = arith.constant 0 : index
    %c0_25 = arith.constant 0 : index
    %37 = vector.load %arg10[%c0_23, %c0_24, %c0_25] : memref<4x8x8xf32, #tpu.memory_space<vmem>>, vector<1x8x8xf32>
    %38 = vector.shape_cast %37 : vector<1x8x8xf32> to vector<8x8xf32>
    %39 = vector.shape_cast %36 : vector<8x8xf32> to vector<1x8x8xf32>
    tpu.vector_store %arg10[%c0_23, %c0_24, %c0_25], %39 {strides = array<i32>} : memref<4x8x8xf32, #tpu.memory_space<vmem>>, vector<1x8x8xf32>,
    %c0_26 = arith.constant 0 : index
    %c0_27 = arith.constant 0 : index
    %c0_28 = arith.constant 0 : index
    %40 = vector.load %arg8[%c0_26, %c0_27, %c0_28] : memref<4x8x1xf32, #tpu.memory_space<vmem>>, vector<1x8x1xf32>
    %41 = vector.shape_cast %40 : vector<1x8x1xf32> to vector<8x1xf32>
    %42 = vector.shape_cast %16 : vector<8x1xf32> to vector<1x8x1xf32>
    tpu.vector_store %arg8[%c0_26, %c0_27, %c0_28], %42 {strides = array<i32>} : memref<4x8x1xf32, #tpu.memory_space<vmem>>, vector<1x8x1xf32>,
    %c0_29 = arith.constant 0 : index
    %c0_30 = arith.constant 0 : index
    %c8 = arith.constant 8 : index
    %43 = vector.load %arg4[%c0_29, %c0_30, %c8] : memref<1x8x96xf32, #tpu.memory_space<vmem>>, vector<1x8x8xf32>
    %44 = vector.shape_cast %43 : vector<1x8x8xf32> to vector<8x8xf32>
    %c0_31 = arith.constant 0 : index
    %c0_32 = arith.constant 0 : index
    %c40 = arith.constant 40 : index
    %45 = vector.load %arg5[%c0_31, %c0_32, %c40] : memref<1x8x96xf32, #tpu.memory_space<vmem>>, vector<1x8x8xf32>
    %46 = vector.shape_cast %45 : vector<1x8x8xf32> to vector<8x8xf32>
    %c0_33 = arith.constant 0 : index
    %c0_34 = arith.constant 0 : index
    %c72 = arith.constant 72 : index
    %47 = vector.load %arg6[%c0_33, %c0_34, %c72] : memref<1x8x96xf32, #tpu.memory_space<vmem>>, vector<1x8x8xf32>
    %48 = vector.shape_cast %47 : vector<1x8x8xf32> to vector<8x8xf32>
    %cst_35 = arith.constant dense<0.000000e+00> : vector<8x8xf32>
    %49 = tpu.matmul %44, %46, %cst_35 {dimension_numbers = #tpu.dot_dimension_numbers<[1], [1], [0], [0], [0, 0, 1, 0], [], []>} : vector<8x8xf32>, vector<8x8xf32>, vector<8x8xf32> -> vector<8x8xf32>
    %cst_36 = arith.constant 0.353553385 : f32
    %50 = vector.broadcast %cst_36 : f32 to vector<8x8xf32>
    %51 = arith.mulf %49, %50 : vector<8x8xf32>
    %c1 = arith.constant 1 : index
    %c0_37 = arith.constant 0 : index
    %c0_38 = arith.constant 0 : index
    %52 = vector.load %arg8[%c1, %c0_37, %c0_38] : memref<4x8x1xf32, #tpu.memory_space<vmem>>, vector<1x8x1xf32>
    %53 = vector.shape_cast %52 : vector<1x8x1xf32> to vector<8x1xf32>
    %cst_39 = arith.constant dense<0xFF800000> : vector<8xf32>
    %54 = vector.multi_reduction <maximumf>, %51, %cst_39 [1] : vector<8x8xf32> to vector<8xf32>
    %55 = vector.shape_cast %54 : vector<8xf32> to vector<8x1xf32>
    %56 = arith.maximumf %53, %55 : vector<8x1xf32>
    %57 = arith.subf %53, %56 : vector<8x1xf32>
    %58 = math.exp %57 : vector<8x1xf32>
    %59 = vector.broadcast %56 : vector<8x1xf32> to vector<8x8xf32>
    %60 = arith.subf %51, %59 : vector<8x8xf32>
    %61 = math.exp %60 : vector<8x8xf32>
    %c1_40 = arith.constant 1 : index
    %c0_41 = arith.constant 0 : index
    %c0_42 = arith.constant 0 : index
    %62 = vector.load %arg9[%c1_40, %c0_41, %c0_42] : memref<4x8x1xf32, #tpu.memory_space<vmem>>, vector<1x8x1xf32>
    %63 = vector.shape_cast %62 : vector<1x8x1xf32> to vector<8x1xf32>
    %64 = arith.mulf %58, %63 : vector<8x1xf32>
    %cst_43 = arith.constant dense<0.000000e+00> : vector<8xf32>
    %65 = vector.multi_reduction <add>, %61, %cst_43 [1] : vector<8x8xf32> to vector<8xf32>
    %66 = vector.shape_cast %65 : vector<8xf32> to vector<8x1xf32>
    %67 = arith.addf %64, %66 : vector<8x1xf32>
    %c1_44 = arith.constant 1 : index
    %c0_45 = arith.constant 0 : index
    %c0_46 = arith.constant 0 : index
    %68 = vector.load %arg9[%c1_44, %c0_45, %c0_46] : memref<4x8x1xf32, #tpu.memory_space<vmem>>, vector<1x8x1xf32>
    %69 = vector.shape_cast %68 : vector<1x8x1xf32> to vector<8x1xf32>
    %70 = vector.shape_cast %67 : vector<8x1xf32> to vector<1x8x1xf32>
    tpu.vector_store %arg9[%c1_44, %c0_45, %c0_46], %70 {strides = array<i32>} : memref<4x8x1xf32, #tpu.memory_space<vmem>>, vector<1x8x1xf32>,
    %c1_47 = arith.constant 1 : index
    %c0_48 = arith.constant 0 : index
    %c0_49 = arith.constant 0 : index
    %71 = vector.load %arg10[%c1_47, %c0_48, %c0_49] : memref<4x8x8xf32, #tpu.memory_space<vmem>>, vector<1x8x8xf32>
    %72 = vector.shape_cast %71 : vector<1x8x8xf32> to vector<8x8xf32>
    %73 = vector.broadcast %58 : vector<8x1xf32> to vector<8x8xf32>
    %74 = arith.mulf %73, %72 : vector<8x8xf32>
    %cst_50 = arith.constant dense<0.000000e+00> : vector<8x8xf32>
    %75 = tpu.matmul %61, %48, %cst_50 {dimension_numbers = #tpu.dot_dimension_numbers<[1], [0], [0], [1], [0, 0, 1, 1], [], []>} : vector<8x8xf32>, vector<8x8xf32>, vector<8x8xf32> -> vector<8x8xf32>
    %76 = arith.addf %74, %75 : vector<8x8xf32>
    %c1_51 = arith.constant 1 : index
    %c0_52 = arith.constant 0 : index
    %c0_53 = arith.constant 0 : index
    %77 = vector.load %arg10[%c1_51, %c0_52, %c0_53] : memref<4x8x8xf32, #tpu.memory_space<vmem>>, vector<1x8x8xf32>
    %78 = vector.shape_cast %77 : vector<1x8x8xf32> to vector<8x8xf32>
    %79 = vector.shape_cast %76 : vector<8x8xf32> to vector<1x8x8xf32>
    tpu.vector_store %arg10[%c1_51, %c0_52, %c0_53], %79 {strides = array<i32>} : memref<4x8x8xf32, #tpu.memory_space<vmem>>, vector<1x8x8xf32>,
    %c1_54 = arith.constant 1 : index
    %c0_55 = arith.constant 0 : index
    %c0_56 = arith.constant 0 : index
    %80 = vector.load %arg8[%c1_54, %c0_55, %c0_56] : memref<4x8x1xf32, #tpu.memory_space<vmem>>, vector<1x8x1xf32>
    %81 = vector.shape_cast %80 : vector<1x8x1xf32> to vector<8x1xf32>
    %82 = vector.shape_cast %56 : vector<8x1xf32> to vector<1x8x1xf32>
    tpu.vector_store %arg8[%c1_54, %c0_55, %c0_56], %82 {strides = array<i32>} : memref<4x8x1xf32, #tpu.memory_space<vmem>>, vector<1x8x1xf32>,
    %c0_57 = arith.constant 0 : index
    %c0_58 = arith.constant 0 : index
    %c16 = arith.constant 16 : index
    %83 = vector.load %arg4[%c0_57, %c0_58, %c16] : memref<1x8x96xf32, #tpu.memory_space<vmem>>, vector<1x8x8xf32>
    %84 = vector.shape_cast %83 : vector<1x8x8xf32> to vector<8x8xf32>
    %c0_59 = arith.constant 0 : index
    %c0_60 = arith.constant 0 : index
    %c48 = arith.constant 48 : index
    %85 = vector.load %arg5[%c0_59, %c0_60, %c48] : memref<1x8x96xf32, #tpu.memory_space<vmem>>, vector<1x8x8xf32>
    %86 = vector.shape_cast %85 : vector<1x8x8xf32> to vector<8x8xf32>
    %c0_61 = arith.constant 0 : index
    %c0_62 = arith.constant 0 : index
    %c80 = arith.constant 80 : index
    %87 = vector.load %arg6[%c0_61, %c0_62, %c80] : memref<1x8x96xf32, #tpu.memory_space<vmem>>, vector<1x8x8xf32>
    %88 = vector.shape_cast %87 : vector<1x8x8xf32> to vector<8x8xf32>
    %cst_63 = arith.constant dense<0.000000e+00> : vector<8x8xf32>
    %89 = tpu.matmul %84, %86, %cst_63 {dimension_numbers = #tpu.dot_dimension_numbers<[1], [1], [0], [0], [0, 0, 1, 0], [], []>} : vector<8x8xf32>, vector<8x8xf32>, vector<8x8xf32> -> vector<8x8xf32>
    %cst_64 = arith.constant 0.353553385 : f32
    %90 = vector.broadcast %cst_64 : f32 to vector<8x8xf32>
    %91 = arith.mulf %89, %90 : vector<8x8xf32>
    %c2 = arith.constant 2 : index
    %c0_65 = arith.constant 0 : index
    %c0_66 = arith.constant 0 : index
    %92 = vector.load %arg8[%c2, %c0_65, %c0_66] : memref<4x8x1xf32, #tpu.memory_space<vmem>>, vector<1x8x1xf32>
    %93 = vector.shape_cast %92 : vector<1x8x1xf32> to vector<8x1xf32>
    %cst_67 = arith.constant dense<0xFF800000> : vector<8xf32>
    %94 = vector.multi_reduction <maximumf>, %91, %cst_67 [1] : vector<8x8xf32> to vector<8xf32>
    %95 = vector.shape_cast %94 : vector<8xf32> to vector<8x1xf32>
    %96 = arith.maximumf %93, %95 : vector<8x1xf32>
    %97 = arith.subf %93, %96 : vector<8x1xf32>
    %98 = math.exp %97 : vector<8x1xf32>
    %99 = vector.broadcast %96 : vector<8x1xf32> to vector<8x8xf32>
    %100 = arith.subf %91, %99 : vector<8x8xf32>
    %101 = math.exp %100 : vector<8x8xf32>
    %c2_68 = arith.constant 2 : index
    %c0_69 = arith.constant 0 : index
    %c0_70 = arith.constant 0 : index
    %102 = vector.load %arg9[%c2_68, %c0_69, %c0_70] : memref<4x8x1xf32, #tpu.memory_space<vmem>>, vector<1x8x1xf32>
    %103 = vector.shape_cast %102 : vector<1x8x1xf32> to vector<8x1xf32>
    %104 = arith.mulf %98, %103 : vector<8x1xf32>
    %cst_71 = arith.constant dense<0.000000e+00> : vector<8xf32>
    %105 = vector.multi_reduction <add>, %101, %cst_71 [1] : vector<8x8xf32> to vector<8xf32>
    %106 = vector.shape_cast %105 : vector<8xf32> to vector<8x1xf32>
    %107 = arith.addf %104, %106 : vector<8x1xf32>
    %c2_72 = arith.constant 2 : index
    %c0_73 = arith.constant 0 : index
    %c0_74 = arith.constant 0 : index
    %108 = vector.load %arg9[%c2_72, %c0_73, %c0_74] : memref<4x8x1xf32, #tpu.memory_space<vmem>>, vector<1x8x1xf32>
    %109 = vector.shape_cast %108 : vector<1x8x1xf32> to vector<8x1xf32>
    %110 = vector.shape_cast %107 : vector<8x1xf32> to vector<1x8x1xf32>
    tpu.vector_store %arg9[%c2_72, %c0_73, %c0_74], %110 {strides = array<i32>} : memref<4x8x1xf32, #tpu.memory_space<vmem>>, vector<1x8x1xf32>,
    %c2_75 = arith.constant 2 : index
    %c0_76 = arith.constant 0 : index
    %c0_77 = arith.constant 0 : index
    %111 = vector.load %arg10[%c2_75, %c0_76, %c0_77] : memref<4x8x8xf32, #tpu.memory_space<vmem>>, vector<1x8x8xf32>
    %112 = vector.shape_cast %111 : vector<1x8x8xf32> to vector<8x8xf32>
    %113 = vector.broadcast %98 : vector<8x1xf32> to vector<8x8xf32>
    %114 = arith.mulf %113, %112 : vector<8x8xf32>
    %cst_78 = arith.constant dense<0.000000e+00> : vector<8x8xf32>
    %115 = tpu.matmul %101, %88, %cst_78 {dimension_numbers = #tpu.dot_dimension_numbers<[1], [0], [0], [1], [0, 0, 1, 1], [], []>} : vector<8x8xf32>, vector<8x8xf32>, vector<8x8xf32> -> vector<8x8xf32>
    %116 = arith.addf %114, %115 : vector<8x8xf32>
    %c2_79 = arith.constant 2 : index
    %c0_80 = arith.constant 0 : index
    %c0_81 = arith.constant 0 : index
    %117 = vector.load %arg10[%c2_79, %c0_80, %c0_81] : memref<4x8x8xf32, #tpu.memory_space<vmem>>, vector<1x8x8xf32>
    %118 = vector.shape_cast %117 : vector<1x8x8xf32> to vector<8x8xf32>
    %119 = vector.shape_cast %116 : vector<8x8xf32> to vector<1x8x8xf32>
    tpu.vector_store %arg10[%c2_79, %c0_80, %c0_81], %119 {strides = array<i32>} : memref<4x8x8xf32, #tpu.memory_space<vmem>>, vector<1x8x8xf32>,
    %c2_82 = arith.constant 2 : index
    %c0_83 = arith.constant 0 : index
    %c0_84 = arith.constant 0 : index
    %120 = vector.load %arg8[%c2_82, %c0_83, %c0_84] : memref<4x8x1xf32, #tpu.memory_space<vmem>>, vector<1x8x1xf32>
    %121 = vector.shape_cast %120 : vector<1x8x1xf32> to vector<8x1xf32>
    %122 = vector.shape_cast %96 : vector<8x1xf32> to vector<1x8x1xf32>
    tpu.vector_store %arg8[%c2_82, %c0_83, %c0_84], %122 {strides = array<i32>} : memref<4x8x1xf32, #tpu.memory_space<vmem>>, vector<1x8x1xf32>,
    %c0_85 = arith.constant 0 : index
    %c0_86 = arith.constant 0 : index
    %c24 = arith.constant 24 : index
    %123 = vector.load %arg4[%c0_85, %c0_86, %c24] : memref<1x8x96xf32, #tpu.memory_space<vmem>>, vector<1x8x8xf32>
    %124 = vector.shape_cast %123 : vector<1x8x8xf32> to vector<8x8xf32>
    %c0_87 = arith.constant 0 : index
    %c0_88 = arith.constant 0 : index
    %c56 = arith.constant 56 : index
    %125 = vector.load %arg5[%c0_87, %c0_88, %c56] : memref<1x8x96xf32, #tpu.memory_space<vmem>>, vector<1x8x8xf32>
    %126 = vector.shape_cast %125 : vector<1x8x8xf32> to vector<8x8xf32>
    %c0_89 = arith.constant 0 : index
    %c0_90 = arith.constant 0 : index
    %c88 = arith.constant 88 : index
    %127 = vector.load %arg6[%c0_89, %c0_90, %c88] : memref<1x8x96xf32, #tpu.memory_space<vmem>>, vector<1x8x8xf32>
    %128 = vector.shape_cast %127 : vector<1x8x8xf32> to vector<8x8xf32>
    %cst_91 = arith.constant dense<0.000000e+00> : vector<8x8xf32>
    %129 = tpu.matmul %124, %126, %cst_91 {dimension_numbers = #tpu.dot_dimension_numbers<[1], [1], [0], [0], [0, 0, 1, 0], [], []>} : vector<8x8xf32>, vector<8x8xf32>, vector<8x8xf32> -> vector<8x8xf32>
    %cst_92 = arith.constant 0.353553385 : f32
    %130 = vector.broadcast %cst_92 : f32 to vector<8x8xf32>
    %131 = arith.mulf %129, %130 : vector<8x8xf32>
    %c3 = arith.constant 3 : index
    %c0_93 = arith.constant 0 : index
    %c0_94 = arith.constant 0 : index
    %132 = vector.load %arg8[%c3, %c0_93, %c0_94] : memref<4x8x1xf32, #tpu.memory_space<vmem>>, vector<1x8x1xf32>
    %133 = vector.shape_cast %132 : vector<1x8x1xf32> to vector<8x1xf32>
    %cst_95 = arith.constant dense<0xFF800000> : vector<8xf32>
    %134 = vector.multi_reduction <maximumf>, %131, %cst_95 [1] : vector<8x8xf32> to vector<8xf32>
    %135 = vector.shape_cast %134 : vector<8xf32> to vector<8x1xf32>
    %136 = arith.maximumf %133, %135 : vector<8x1xf32>
    %137 = arith.subf %133, %136 : vector<8x1xf32>
    %138 = math.exp %137 : vector<8x1xf32>
    %139 = vector.broadcast %136 : vector<8x1xf32> to vector<8x8xf32>
    %140 = arith.subf %131, %139 : vector<8x8xf32>
    %141 = math.exp %140 : vector<8x8xf32>
    %c3_96 = arith.constant 3 : index
    %c0_97 = arith.constant 0 : index
    %c0_98 = arith.constant 0 : index
    %142 = vector.load %arg9[%c3_96, %c0_97, %c0_98] : memref<4x8x1xf32, #tpu.memory_space<vmem>>, vector<1x8x1xf32>
    %143 = vector.shape_cast %142 : vector<1x8x1xf32> to vector<8x1xf32>
    %144 = arith.mulf %138, %143 : vector<8x1xf32>
    %cst_99 = arith.constant dense<0.000000e+00> : vector<8xf32>
    %145 = vector.multi_reduction <add>, %141, %cst_99 [1] : vector<8x8xf32> to vector<8xf32>
    %146 = vector.shape_cast %145 : vector<8xf32> to vector<8x1xf32>
    %147 = arith.addf %144, %146 : vector<8x1xf32>
    %c3_100 = arith.constant 3 : index
    %c0_101 = arith.constant 0 : index
    %c0_102 = arith.constant 0 : index
    %148 = vector.load %arg9[%c3_100, %c0_101, %c0_102] : memref<4x8x1xf32, #tpu.memory_space<vmem>>, vector<1x8x1xf32>
    %149 = vector.shape_cast %148 : vector<1x8x1xf32> to vector<8x1xf32>
    %150 = vector.shape_cast %147 : vector<8x1xf32> to vector<1x8x1xf32>
    tpu.vector_store %arg9[%c3_100, %c0_101, %c0_102], %150 {strides = array<i32>} : memref<4x8x1xf32, #tpu.memory_space<vmem>>, vector<1x8x1xf32>,
    %c3_103 = arith.constant 3 : index
    %c0_104 = arith.constant 0 : index
    %c0_105 = arith.constant 0 : index
    %151 = vector.load %arg10[%c3_103, %c0_104, %c0_105] : memref<4x8x8xf32, #tpu.memory_space<vmem>>, vector<1x8x8xf32>
    %152 = vector.shape_cast %151 : vector<1x8x8xf32> to vector<8x8xf32>
    %153 = vector.broadcast %138 : vector<8x1xf32> to vector<8x8xf32>
    %154 = arith.mulf %153, %152 : vector<8x8xf32>
    %cst_106 = arith.constant dense<0.000000e+00> : vector<8x8xf32>
    %155 = tpu.matmul %141, %128, %cst_106 {dimension_numbers = #tpu.dot_dimension_numbers<[1], [0], [0], [1], [0, 0, 1, 1], [], []>} : vector<8x8xf32>, vector<8x8xf32>, vector<8x8xf32> -> vector<8x8xf32>
    %156 = arith.addf %154, %155 : vector<8x8xf32>
    %c3_107 = arith.constant 3 : index
    %c0_108 = arith.constant 0 : index
    %c0_109 = arith.constant 0 : index
    %157 = vector.load %arg10[%c3_107, %c0_108, %c0_109] : memref<4x8x8xf32, #tpu.memory_space<vmem>>, vector<1x8x8xf32>
    %158 = vector.shape_cast %157 : vector<1x8x8xf32> to vector<8x8xf32>
    %159 = vector.shape_cast %156 : vector<8x8xf32> to vector<1x8x8xf32>
    tpu.vector_store %arg10[%c3_107, %c0_108, %c0_109], %159 {strides = array<i32>} : memref<4x8x8xf32, #tpu.memory_space<vmem>>, vector<1x8x8xf32>,
    %c3_110 = arith.constant 3 : index
    %c0_111 = arith.constant 0 : index
    %c0_112 = arith.constant 0 : index
    %160 = vector.load %arg8[%c3_110, %c0_111, %c0_112] : memref<4x8x1xf32, #tpu.memory_space<vmem>>, vector<1x8x1xf32>
    %161 = vector.shape_cast %160 : vector<1x8x1xf32> to vector<8x1xf32>
    %162 = vector.shape_cast %136 : vector<8x1xf32> to vector<1x8x1xf32>
    tpu.vector_store %arg8[%c3_110, %c0_111, %c0_112], %162 {strides = array<i32>} : memref<4x8x1xf32, #tpu.memory_space<vmem>>, vector<1x8x1xf32>,
    %c0_i32_113 = arith.constant 0 : i32
    %163 = arith.cmpi eq, %arg3, %c0_i32_113 : i32
    %164 = arith.extui %163 : i1 to i32
    %c0_i32_114 = arith.constant 0 : i32
    %165 = arith.cmpi ne, %164, %c0_i32_114 : i32
    scf.if %165 {
      %c0_115 = arith.constant 0 : index
      %c0_116 = arith.constant 0 : index
      %c0_117 = arith.constant 0 : index
      %166 = vector.load %arg10[%c0_115, %c0_116, %c0_117] : memref<4x8x8xf32, #tpu.memory_space<vmem>>, vector<1x8x8xf32>
      %167 = vector.shape_cast %166 : vector<1x8x8xf32> to vector<8x8xf32>
      %c0_118 = arith.constant 0 : index
      %c0_119 = arith.constant 0 : index
      %c0_120 = arith.constant 0 : index
      %168 = vector.load %arg9[%c0_118, %c0_119, %c0_120] : memref<4x8x1xf32, #tpu.memory_space<vmem>>, vector<1x8x1xf32>
      %169 = vector.shape_cast %168 : vector<1x8x1xf32> to vector<8x1xf32>
      %170 = vector.broadcast %169 : vector<8x1xf32> to vector<8x8xf32>
      %171 = arith.divf %167, %170 : vector<8x8xf32>
      %c1_121 = arith.constant 1 : index
      %c0_122 = arith.constant 0 : index
      %c0_123 = arith.constant 0 : index
      %172 = vector.load %arg10[%c1_121, %c0_122, %c0_123] : memref<4x8x8xf32, #tpu.memory_space<vmem>>, vector<1x8x8xf32>
      %173 = vector.shape_cast %172 : vector<1x8x8xf32> to vector<8x8xf32>
      %c1_124 = arith.constant 1 : index
      %c0_125 = arith.constant 0 : index
      %c0_126 = arith.constant 0 : index
      %174 = vector.load %arg9[%c1_124, %c0_125, %c0_126] : memref<4x8x1xf32, #tpu.memory_space<vmem>>, vector<1x8x1xf32>
      %175 = vector.shape_cast %174 : vector<1x8x1xf32> to vector<8x1xf32>
      %176 = vector.broadcast %175 : vector<8x1xf32> to vector<8x8xf32>
      %177 = arith.divf %173, %176 : vector<8x8xf32>
      %c2_127 = arith.constant 2 : index
      %c0_128 = arith.constant 0 : index
      %c0_129 = arith.constant 0 : index
      %178 = vector.load %arg10[%c2_127, %c0_128, %c0_129] : memref<4x8x8xf32, #tpu.memory_space<vmem>>, vector<1x8x8xf32>
      %179 = vector.shape_cast %178 : vector<1x8x8xf32> to vector<8x8xf32>
      %c2_130 = arith.constant 2 : index
      %c0_131 = arith.constant 0 : index
      %c0_132 = arith.constant 0 : index
      %180 = vector.load %arg9[%c2_130, %c0_131, %c0_132] : memref<4x8x1xf32, #tpu.memory_space<vmem>>, vector<1x8x1xf32>
      %181 = vector.shape_cast %180 : vector<1x8x1xf32> to vector<8x1xf32>
      %182 = vector.broadcast %181 : vector<8x1xf32> to vector<8x8xf32>
      %183 = arith.divf %179, %182 : vector<8x8xf32>
      %c3_133 = arith.constant 3 : index
      %c0_134 = arith.constant 0 : index
      %c0_135 = arith.constant 0 : index
      %184 = vector.load %arg10[%c3_133, %c0_134, %c0_135] : memref<4x8x8xf32, #tpu.memory_space<vmem>>, vector<1x8x8xf32>
      %185 = vector.shape_cast %184 : vector<1x8x8xf32> to vector<8x8xf32>
      %c3_136 = arith.constant 3 : index
      %c0_137 = arith.constant 0 : index
      %c0_138 = arith.constant 0 : index
      %186 = vector.load %arg9[%c3_136, %c0_137, %c0_138] : memref<4x8x1xf32, #tpu.memory_space<vmem>>, vector<1x8x1xf32>
      %187 = vector.shape_cast %186 : vector<1x8x1xf32> to vector<8x1xf32>
      %188 = vector.broadcast %187 : vector<8x1xf32> to vector<8x8xf32>
      %189 = arith.divf %185, %188 : vector<8x8xf32>
      %190 = tpu.concatenate %171, %177, %183, %189 in 1 : vector<8x8xf32>, vector<8x8xf32>, vector<8x8xf32>, vector<8x8xf32> -> vector<8x32xf32>
      %c0_139 = arith.constant 0 : index
      %c0_140 = arith.constant 0 : index
      %c0_141 = arith.constant 0 : index
      %191 = vector.load %arg7[%c0_139, %c0_140, %c0_141] : memref<1x8x32xf32, #tpu.memory_space<vmem>>, vector<1x8x32xf32>
      %192 = vector.shape_cast %191 : vector<1x8x32xf32> to vector<8x32xf32>
      %193 = vector.shape_cast %190 : vector<8x32xf32> to vector<1x8x32xf32>
      tpu.vector_store %arg7[%c0_139, %c0_140, %c0_141], %193 {strides = array<i32>} : memref<1x8x32xf32, #tpu.memory_space<vmem>>, vector<1x8x32xf32>,
    } else {
    }
    return
  }
  func.func @transform_0(%arg0: i32, %arg1: i32, %arg2: i32, %arg3: i32) -> (i32, i32, i32) {
    %c0_i32 = arith.constant 0 : i32
    %c0_i32_0 = arith.constant 0 : i32
    return %arg0, %arg2, %c0_i32 : i32, i32, i32
  }
  func.func @transform_1(%arg0: i32, %arg1: i32, %arg2: i32, %arg3: i32) -> (i32, i32, i32) {
    %c0_i32 = arith.constant 0 : i32
    %c0_i32_0 = arith.constant 0 : i32
    return %arg0, %arg3, %c0_i32 : i32, i32, i32
  }
  func.func @transform_2(%arg0: i32, %arg1: i32, %arg2: i32, %arg3: i32) -> (i32, i32, i32) {
    %c0_i32 = arith.constant 0 : i32
    %c0_i32_0 = arith.constant 0 : i32
    return %arg0, %arg3, %c0_i32 : i32, i32, i32
  }
  func.func @transform_3(%arg0: i32, %arg1: i32, %arg2: i32, %arg3: i32) -> (i32, i32, i32) {
    %c0_i32 = arith.constant 0 : i32
    %c0_i32_0 = arith.constant 0 : i32
    return %arg0, %arg2, %c0_i32 : i32, i32, i32
  }
}

</mosaic_0001>

<bundles_post_ra>
// kernel: self_attention.2
= control target key start
LH: loop header
LB: loop body
LE: loop exit
PB: predicated region body
PF: predicated region fallthrough
CT: control target
= control target key end

     0   :  { %8 = vsyncpa [#allocation4], 0  ;;  %s416_s0 = inlined_call_operand.hbm [shape: f32[16,32], index: 0, kind: input, shape index: {}]   ;;  %s417_s1 = inlined_call_operand.hbm [shape: f32[32,96], index: 1, kind: input, shape index: {}]   ;;  %s418_s2 = inlined_call_operand.hbm [shape: f32[1,96], index: 2, kind: input, shape index: {}]   ;;  %s419_s3 = inlined_call_operand.hbm [shape: f32[16,96], index: 3, kind: output, shape index: {}]  }
   0x1   :  { %9 = vsyncpa [#allocation7], 0 }
   0x2   :  { %10 = vsyncpa [#allocation5], 0  ;;  %s319_s12 = smov [#allocation6]   ;;  %s320_s14 = smov [#allocation3]  }
   0x3   :  { %s28_s13 = sshll.u32 %s319_s12, 4  ;;  %s16_s15 = sshll.u32 %s320_s14, 4  ;;  %s29_s13 = int_to_ptr.vmem [resolvable:$true] %s28_s13  ;;  %s346_s15 = int_to_ptr.vmem [resolvable:$true] %s16_s15 }
   0x4   :  { %s225_s18 = scalar_lea.hbm %s417_s1, 512 }
   0x5   :  { %p226_p0 = scmp.ne.s32.totalorder %s417_s1, %s225_s18  ;;  %p229_p1 = scmp.lt.u32.totalorder %s225_s18, %s417_s1 }
   0x7   :  { %p231_p2 = pnand %p229_p1, %p226_p0 }
   0x9   :  { %234 = shalt.err (!%p231_p2)
}
   0xa   :  { %s235_s23 = scalar_lea.vmem %s29_s13, 512  ;;  %p240_p4 = scmp.lt.s32.totalorder %s29_s13, %s29_s13 }
   0xb   :  { %p236_p3 = scmp.ne.s32.totalorder %s29_s13, %s235_s23  ;;  %p241_p5 = scmp.lt.s32.totalorder %s235_s23, %s235_s23 }
   0xd   :  { %p242_p6 = por %p241_p5, %p240_p4 }
   0xf   :  { %p243_p7 = pnand %p242_p6, %p236_p3 }
  0x11   :  { %246 = shalt.err (!%p243_p7)
}
  0x12   :  { %s321_s24 = smov 128   ;;  %s322_s25 = smov 8  }
  0x13   :  { %34 = dma.hbm_to_vmem [thread:$0]  %s417_s1, 512, %s29_s13, [#allocation7], %s321_s24, %s321_s24, %s322_s25  }
  0x14   :  { %s247_s30 = scalar_lea.hbm %s416_s0, 256 }
  0x15   :  { %p248_p8 = scmp.ne.s32.totalorder %s416_s0, %s247_s30  ;;  %p251_p9 = scmp.lt.u32.totalorder %s247_s30, %s416_s0 }
  0x17   :  { %p253_p10 = pnand %p251_p9, %p248_p8 }
  0x19   :  { %256 = shalt.err (!%p253_p10)
}
  0x1a   :  { %s257_s8 = scalar_lea.vmem %s346_s15, 256  ;;  %p262_p12 = scmp.lt.s32.totalorder %s346_s15, %s346_s15 }
  0x1b   :  { %p258_p11 = scmp.ne.s32.totalorder %s346_s15, %s257_s8  ;;  %p263_p13 = scmp.lt.s32.totalorder %s257_s8, %s257_s8 }
  0x1d   :  { %p264_p0 = por %p263_p13, %p262_p12 }
  0x1f   :  { %p265_p1 = pnand %p264_p0, %p258_p11 }
  0x21   :  { %268 = shalt.err (!%p265_p1)
}
  0x22   :  { %22 = dma.hbm_to_vmem [thread:$0]  %s416_s0, 256, %s346_s15, [#allocation4], %s321_s24, %s321_s24, %s322_s25  }
  0x23   :  { %s323_s10 = smov [#allocation8]   ;;  %s269_s14 = scalar_lea.hbm %s418_s2, 16 }
  0x24   :  { %s41_s11 = sshll.u32 %s323_s10, 4  ;;  %p270_p2 = scmp.ne.s32.totalorder %s418_s2, %s269_s14  ;;  %s42_s11 = int_to_ptr.vmem [resolvable:$true] %s41_s11 }
  0x25   :  { %p273_p3 = scmp.lt.u32.totalorder %s269_s14, %s418_s2 }
  0x27   :  { %p275_p4 = pnand %p273_p3, %p270_p2 }
  0x29   :  { %278 = shalt.err (!%p275_p4)
}
  0x2a   :  { %s279_s20 = scalar_lea.vmem %s42_s11, 16  ;;  %s283_s0 = scalar_lea.vmem %s42_s11, 32 }
  0x2b   :  { %p280_p5 = scmp.ne.s32.totalorder %s42_s11, %s279_s20  ;;  %p284_p6 = scmp.lt.s32.totalorder %s42_s11, %s42_s11 }
  0x2c   :  { %p285_p7 = scmp.lt.s32.totalorder %s283_s0, %s279_s20 }
  0x2e   :  { %p286_p8 = por %p285_p7, %p284_p6 }
  0x30   :  { %p287_p9 = pnand %p286_p8, %p280_p5 }
  0x32   :  { %290 = shalt.err (!%p287_p9)
}
  0x33   :  { %44 = dma.hbm_to_vmem [thread:$0]  %s418_s2, 16, %s42_s11, [#allocation7]  }
  0x34   :  { %313 = dma.done.wait [#allocation4], 256  }
  0x35   :  { %314 = vsyncadd [#allocation4], 4294967040 }
  0x36   :  { %315 = dma.done.wait [#allocation7], 528  }
  0x37   :  { %316 = vsyncadd [#allocation7], 4294966768  ;;  %vm58_vm0 = vcmask 785408   ;;  %v324_v0 = vmov 0.0   ;;  %vm69_vm1 = vcmask 261120   ;;  %v65_v1 = vld [vmem:[#allocation6] sm:$0xff] }
  0x38   :  { %60 = vst.msk [vmem:[#allocation2 + $0x8] sm:$0xff] %vm58_vm0, %v324_v0  ;;  %59 = vst.msk [vmem:[#allocation2] sm:$0xff] %vm58_vm0, %v324_v0  ;;  %v66_v2 = vld [vmem:[#allocation6 + $0x8] sm:$0xff]  ;;  %v67_v3 = vld [vmem:[#allocation6 + $0x10] sm:$0xff]  ;;  %s325_s2 = smov [#allocation9]  }
  0x39   :  { %v210_v4 = vpack.c.bf16 %v66_v2, %v65_v1  ;;  %v68_v5 = vld [vmem:[#allocation6 + $0x18] sm:$0xff]  ;;  %v63_v6 = vld [vmem:[#allocation3] sm:$0xff]  ;;  %v192_v15 = vld [vmem:[#allocation8] ss:$0 sm:$0xff]  ;;  %s177_s22 = sshll.u32 %s325_s2, 4  ;;  %s178_s22 = int_to_ptr.vmem [resolvable:$true] %s177_s22 }
  0x3a   :  { %v214_v7 = vpack.c.bf16 %v68_v5, %v67_v3  ;;  %207 = vmatprep.mubr.msk.f32.mxu0 %vm69_vm1, %v63_v6  ;;  %v64_v8 = vld [vmem:[#allocation3 + $0x8] sm:$0xff]  ;;  %s291_s23 = scalar_lea.vmem %s178_s22, 256  ;;  %p296_p11 = scmp.lt.s32.totalorder %s178_s22, %s178_s22 }
  0x3b   :  { %211 = vmatprep.subr.bf16.mxu0 %v210_v4  ;;  %p292_p10 = scmp.ne.s32.totalorder %s178_s22, %s291_s23  ;;  %p297_p12 = scmp.lt.s32.totalorder %s291_s23, %s291_s23 }
  0x3c   :  { %213 = vmatpush3.bf16.msra.mxu0 %v210_v4 }
  0x3d   :  { %215 = vmatprep.subr.bf16.mxu0 %v214_v7  ;;  %p298_p13 = por %p297_p12, %p296_p11 }
  0x3f   :  { %v62_v9 = vld [vmem:[#allocation2 + $0x8] sm:$0xff]  ;;  %v61_v10 = vld [vmem:[#allocation2] sm:$0xff]  ;;  %p299_p0 = pnand %p298_p13, %p292_p10 }
  0x40   :  { %217 = vmatpush3.bf16.msra.mxu0 %v214_v7 }
  0x43   :  { %208 = vmatmul.mubr.msk.f32.vlgmr.msra.gmra.mrb[0].mxu0 %vm69_vm1, %v64_v8 }
 0x116   :  { %v209_v11 = vpop.f32.mrb[0].mxu0 }
 0x117   :  { %v152_v12 = vadd.f32 %v209_v11, %v62_v9  ;;  %v142_v13 = vpop.f32.mrb[1].mxu0 }
 0x118   :  { %v151_v14 = vadd.f32 %v142_v13, %v61_v10 }
 0x119   :  { %155 = vst.msk [vmem:[#allocation2 + $0x8] sm:$0xff] %vm58_vm0, %v152_v12 }
 0x11a   :  { %154 = vst.msk [vmem:[#allocation2] sm:$0xff] %vm58_vm0, %v151_v14 }
 0x120   :  { %v160_v16 = vld [vmem:[#allocation2 + $0x8] sm:$0xff] }
 0x121   :  { %v159_v17 = vld [vmem:[#allocation2] sm:$0xff]  ;;  %v169_v18 = vadd.f32 %v192_v15, %v160_v16 }
 0x122   :  { %v168_v19 = vadd.f32 %v192_v15, %v159_v17 }
 0x123   :  { %171 = vst.msk [vmem:[#allocation9 + $0x8] sm:$0xff] %vm58_vm0, %v169_v18 }
 0x124   :  { %170 = vst.msk [vmem:[#allocation9] sm:$0xff] %vm58_vm0, %v168_v19 }
 0x125   :  { %302 = shalt.err (!%p299_p0)
}
 0x126   :  { %s303_s28 = scalar_lea.hbm %s419_s3, 256 }
 0x127   :  { %p304_p1 = scmp.ne.s32.totalorder %s419_s3, %s303_s28  ;;  %p307_p2 = scmp.lt.u32.totalorder %s303_s28, %s419_s3 }
 0x129   :  { %p309_p3 = pnand %p307_p2, %p304_p1 }
 0x12b   :  { %312 = shalt.err (!%p309_p3)
}
 0x12c   :  { %183 = dma.vmem_to_hbm [thread:$0]  %s178_s22, 256, %s419_s3, [#allocation5], %s321_s24, %s321_s24, %s322_s25  }
 0x12d   :  { %317 = dma.done.wait [#allocation5], 256  }
 0x12e   :  { %318 = vsyncadd [#allocation5], 4294967040 }
 0x12f   :  { %187 = vsyncpa [#allocation4], 1 }
 0x130   :  { %188 = vsyncpa [#allocation7], 1 }
 0x131   :  { %189 = vsyncpa [#allocation5], 1 }

// kernel: self_attention.3
= control target key start
LH: loop header
LB: loop body
LE: loop exit
PB: predicated region body
PF: predicated region fallthrough
CT: control target
= control target key end

     0   :  { %s2083_s0 = inlined_call_operand.hbm [shape: f32[2,8,96], index: 0, kind: input, shape index: {}, may-alias: {0,1,2}]   ;;  %s2084_s1 = inlined_call_operand.hbm [shape: f32[2,8,96], index: 1, kind: input, shape index: {}, may-alias: {0,1,2}]   ;;  %s2085_s2 = inlined_call_operand.hbm [shape: f32[2,8,96], index: 2, kind: input, shape index: {}, may-alias: {0,1,2}]   ;;  %s2086_s3 = inlined_call_operand.hbm [shape: f32[2,8,32], index: 3, kind: output, shape index: {}]  }
   0x1   :  { %2092 = sst [smem:[#allocation18_spill]] %s2084_s1 }
   0x2   :  { %8 = vsyncpa [#allocation6], 0 }
   0x3   :  { %10 = vsyncpa [#allocation6 + $0x1], 0 }
   0x4   :  { %11 = vsyncpa [#allocation9], 0 }
   0x5   :  { %13 = vsyncpa [#allocation9 + $0x1], 0 }
   0x6   :  { %14 = vsyncpa [#allocation7], 0 }
   0x7   :  { %16 = vsyncpa [#allocation7 + $0x1], 0  ;;  %s1721_s12 = smov 0   ;;  %s1723_s13 = smov 0  }
   0x8   :  { %s1725_s14 = smov 0   ;;  %s1727_s15 = smov 0  }
   0x9   :  { %s1729_s16 = smov 0   ;;  %s1731_s17 = smov 0  }
   0xa LB: > { %2093 = sst [smem:[#allocation15_spill]] %s1673_s16  ;;  %s1752_s18 = sadd.s32 4294967295, %s1677_s17   ;;  %s1677_s17 = sphi %s1731_s17, %s22_s17   ;;  %s1673_s16 = sphi %s1729_s16, %s2114_s16   ;;  %s1669_s15 = sphi %s1727_s15, %s2113_s15   ;;  %s1665_s14 = sphi %s1725_s14, %s2117_s14   ;;  %s1661_s13 = sphi %s1723_s13, %s2116_s13   ;;  %s1657_s12 = sphi %s1721_s12, %s2115_s12  }
   0xb   : > { %s1299_s19 = sadd.s32 4294967294, %s1677_s17   ;;  %s48_s20 = sadd.s32 1, %s1673_s16 }
   0xc   : > { %s57_s21 = sadd.s32 1, %s1665_s14  ;;  %p50_p0 = scmp.ge.s32.totalorder %s48_s20, 2 }
   0xd   : > { %p64_p1 = scmp.ne.s32.totalorder %s1665_s14, %s1661_s13  ;;  %p65_p2 = scmp.eq.s32.totalorder %s1677_s17, 0 }
   0xe   : > { %p70_p3 = scmp.ne.s32.totalorder %s1661_s13, %s1657_s12  ;;  %s2119_s20 = smov (%p50_p0, %s48_s20), 0 }
   0xf   : > { %2094 = sst [smem:[#allocation16_spill]] %s2119_s20  ;;  %p1764_p4 = por %p65_p2, %p64_p1 }
  0x10   : > { %p71_p5 = scmp.eq.s32.totalorder %s1752_s18, 0  ;;  %s52_s23 = ssub.s32 %s1673_s16, %s2119_s20 }
  0x11   : > { %p152_p6 = scmp.eq.s32.totalorder %s1752_s18, 1  ;;  %p55_p7 = scmp.eq.s32.totalorder %s52_s23, 0 }
  0x12   : > { %p1772_p8 = por %p71_p5, %p70_p3  ;;  %p158_p10 = scmp.eq.s32.totalorder %s1299_s19, 1 }
  0x13   : > { %p1776_p9 = por %p152_p6, %p64_p1  ;;  %p1407_p13 = scmp.lt.s32.totalorder %s1677_s17, 2 }
  0x14   : > { %s2096_s24 = scalar_select %p1772_p8, 1, 0 }
  0x15   : > { %s2097_s25 = scalar_select %p1776_p9, 1, 0 }
  0x16   : > { %s1781_s26 = scalar_select %p55_p7, %s1665_s14, %s57_s21  }
  0x17   : > { %p1783_p11 = por %p158_p10, %p70_p3  ;;  %s178_s28 = sand.u32 1, %s1665_s14  }
  0x18   : > { %2098 = sst [smem:[#allocation17_spill]] %s1781_s26  ;;  %s1792_s29 = sshll.u32 %s178_s28, 3 }
  0x19   : > { %s2099_s27 = scalar_select %p1783_p11, 1, 0 }
  0x1a   : > { %s1795_s30 = sshll.u32 %s1673_s16, 7  ;;  %p1799_p0 = pnand %p1407_p13, %p1764_p4 }
  0x1b   : > { %s197_s5 = sand.u32 1, %s1677_s17   ;;  %s2101_s1 = sld [smem:[#allocation18_spill]] }
  0x1c   : > { %s2100_s4 = scalar_select %p1799_p0, 1, 0 }
  0x1d   : > { %s201_s9 = scalar_lea.vmem [#allocation8], %s1792_s29  ;;  %s1815_s11 = scalar_lea.sflag [#allocation9], %s197_s5 }
  0x1e   : > { %s209_s10 = sshll.u32 %s201_s9, 4  ;;  %p1821_p4 = pneg %p1799_p0  ;;  %s1812_s10 = int_to_ptr.vmem [resolvable:$true] %s209_s10 }
  0x21   : > { %s1808_s8 = scalar_lea.hbm %s2101_s1, %s1795_s30  ;;  %s1506_s6 = scalar_lea.hbm %s2101_s1, 256 }
  0x22   : > { %s1501_s19 = scalar_lea.hbm %s1808_s8, 128  ;;  %p1507_p7 = scmp.lt.u32.totalorder %s1808_s8, %s2101_s1 }
  0x23   : > { %p1502_p3 = scmp.ne.s32.totalorder %s1808_s8, %s1501_s19  ;;  %p1508_p10 = scmp.lt.u32.totalorder %s1506_s6, %s1501_s19 }
  0x24   : > { %p1510_p12 = scmp.lt.u32.totalorder %s1501_s19, %s1808_s8 }
  0x25   : > { %p1504_p5 = pnand %p1821_p4, %p1502_p3  ;;  %p1509_p13 = por %p1508_p10, %p1507_p7 }
  0x27   : > { %p1505_p6 = pneg %p1504_p5  ;;  %p1511_p1 = por %p1510_p12, %p1509_p13 }
  0x29   : > { %p1512_p2 = pnand %p1511_p1, %p1505_p6 }
  0x2b   : > { %1515 = shalt.err (!%p1512_p2)
}
  0x2c   : > { %s1516_s5 = scalar_lea.vmem %s1812_s10, 128  ;;  %s1679_s22 = smov [#allocation8]  }
  0x2d   : > { %p1517_p3 = scmp.ne.s32.totalorder %s1812_s10, %s1516_s5  ;;  %s1521_s23 = sshll.u32 %s1679_s22, 4  ;;  %s1522_s23 = int_to_ptr.vmem [resolvable:$false] %s1521_s23 }
  0x2e   : > { %s1523_s7 = scalar_lea.vmem %s1522_s23, 256  ;;  %p1524_p9 = scmp.lt.s32.totalorder %s1812_s10, %s1522_s23 }
  0x2f   : > { %p1519_p5 = pnand %p1517_p3, %p1821_p4  ;;  %p1525_p8 = scmp.lt.s32.totalorder %s1523_s7, %s1516_s5 }
  0x31   : > { %p1520_p11 = pneg %p1519_p5  ;;  %p1526_p7 = por %p1525_p8, %p1524_p9 }
  0x33   : > { %p1527_p10 = pnand %p1526_p7, %p1520_p11 }
  0x35   : > { %1530 = shalt.err (!%p1527_p10)
}
  0x36   : > { %1399 = dma.hbm_to_vmem [thread:$0]  (!%p1799_p0), %s1808_s8, 128, %s1812_s10, %s1815_s11  }
  0x37   : > { %p2103_p12 = scmp.lt.s32.totalorder %s1677_s17, 3  ;;  %p2104_p1 = scmp.ge.s32.totalorder %s1677_s17, 1 }
  0x38   : > { %s1857_s5 = scalar_lea.hbm %s2083_s0, %s1795_s30  ;;  %s182_s22 = scalar_lea.vmem [#allocation5], %s1792_s29 }
  0x39   : > { %p1849_p2 = pnand %p2104_p1, %p2103_p12  ;;  %s190_s23 = sshll.u32 %s182_s22, 4  ;;  %s1860_s23 = int_to_ptr.vmem [resolvable:$true] %s190_s23 }
  0x3a   : > { %s1866_s7 = scalar_lea.hbm %s2085_s2, %s1795_s30  ;;  %s179_s1 = scalar_lea.sflag [#allocation6], %s178_s28 }
  0x3b   : > { %s2105_s19 = scalar_select %p1849_p2, 1, 0 }
  0x3c   : > { %s1531_s20 = scalar_lea.hbm %s1857_s5, 128  ;;  %s1536_s16 = scalar_lea.hbm %s2083_s0, 256 }
  0x3d   : > { %p1532_p8 = scmp.ne.s32.totalorder %s1857_s5, %s1531_s20  ;;  %p1537_p6 = scmp.lt.u32.totalorder %s1857_s5, %s2083_s0 }
  0x3e   : > { %p1538_p13 = scmp.lt.u32.totalorder %s1536_s16, %s1531_s20  ;;  %p1540_p5 = scmp.lt.u32.totalorder %s1531_s20, %s1857_s5 }
  0x3f   : > { %p1534_p9 = pnand %p1532_p8, %p1821_p4 }
  0x40   : > { %p1539_p3 = por %p1538_p13, %p1537_p6 }
  0x41   : > { %p1535_p11 = pneg %p1534_p9 }
  0x42   : > { %p1541_p7 = por %p1540_p5, %p1539_p3 }
  0x44   : > { %p1542_p10 = pnand %p1541_p7, %p1535_p11 }
  0x46   : > { %1545 = shalt.err (!%p1542_p10)
}
  0x47   : > { %s1546_s28 = scalar_lea.vmem %s1860_s23, 128  ;;  %s1680_s30 = smov [#allocation5]  }
  0x48   : > { %p1547_p12 = scmp.ne.s32.totalorder %s1860_s23, %s1546_s28  ;;  %s1551_s8 = sshll.u32 %s1680_s30, 4  ;;  %s1552_s8 = int_to_ptr.vmem [resolvable:$false] %s1551_s8 }
  0x49   : > { %s1553_s26 = scalar_lea.vmem %s1552_s8, 256  ;;  %p1554_p9 = scmp.lt.s32.totalorder %s1860_s23, %s1552_s8 }
  0x4a   : > { %p1549_p1 = pnand %p1547_p12, %p1821_p4  ;;  %p1555_p2 = scmp.lt.s32.totalorder %s1553_s26, %s1546_s28 }
  0x4c   : > { %p1550_p8 = pneg %p1549_p1  ;;  %p1556_p6 = por %p1555_p2, %p1554_p9 }
  0x4e   : > { %p1557_p13 = pnand %p1556_p6, %p1550_p8 }
  0x50   : > { %1560 = shalt.err (!%p1557_p13)
}
  0x51   : > { %1396 = dma.hbm_to_vmem [thread:$0]  (!%p1799_p0), %s1857_s5, 128, %s1860_s23, %s179_s1  }
  0x52   : > { %s220_s16 = scalar_lea.vmem [#allocation10], %s1792_s29  ;;  %s1561_s10 = scalar_lea.hbm %s1866_s7, 128 }
  0x53   : > { %s228_s20 = sshll.u32 %s220_s16, 4  ;;  %p1562_p11 = scmp.ne.s32.totalorder %s1866_s7, %s1561_s10  ;;  %s229_s20 = int_to_ptr.vmem [resolvable:$true] %s228_s20 }
  0x54   : > { %s1566_s22 = scalar_lea.hbm %s2085_s2, 256  ;;  %p1567_p5 = scmp.lt.u32.totalorder %s1866_s7, %s2085_s2 }
  0x55   : > { %p1564_p2 = pnand %p1562_p11, %p1821_p4  ;;  %p1568_p7 = scmp.lt.u32.totalorder %s1566_s22, %s1561_s10 }
  0x56   : > { %p1570_p12 = scmp.lt.u32.totalorder %s1561_s10, %s1866_s7 }
  0x57   : > { %p1565_p3 = pneg %p1564_p2  ;;  %p1569_p10 = por %p1568_p7, %p1567_p5 }
  0x59   : > { %p1571_p1 = por %p1570_p12, %p1569_p10 }
  0x5b   : > { %p1572_p8 = pnand %p1571_p1, %p1565_p3 }
  0x5d   : > { %1575 = shalt.err (!%p1572_p8)
}
  0x5e   : > { %s1576_s1 = scalar_lea.vmem %s229_s20, 128  ;;  %s1681_s29 = smov [#allocation10]  }
  0x5f   : > { %p1577_p9 = scmp.ne.s32.totalorder %s229_s20, %s1576_s1  ;;  %s1581_s5 = sshll.u32 %s1681_s29, 4  ;;  %s1582_s5 = int_to_ptr.vmem [resolvable:$false] %s1581_s5 }
  0x60   : > { %s1583_s23 = scalar_lea.vmem %s1582_s5, 256  ;;  %p1584_p11 = scmp.lt.s32.totalorder %s229_s20, %s1582_s5 }
  0x61   : > { %p1579_p6 = pnand %p1577_p9, %p1821_p4  ;;  %p1585_p2 = scmp.lt.s32.totalorder %s1583_s23, %s1576_s1 }
  0x63   : > { %p1580_p13 = pneg %p1579_p6  ;;  %p1586_p0 = por %p1585_p2, %p1584_p11 }
  0x65   : > { %p1587_p5 = pnand %p1586_p0, %p1580_p13 }
  0x67   : > { %1590 = shalt.err (!%p1587_p5)
}
  0x68   : > { %p2106_p7 = scmp.ne.s32.totalorder %s2100_s4, 0  ;;  %p2107_p3 = scmp.ne.s32.totalorder %s2105_s19, 0 }
  0x69   : > { %s1913_s21 = sand.u32 (!%p2107_p3), 1, %s1661_s13   ;;  %p2108_p0 = scmp.ne.s32.totalorder (!%p2107_p3), %s2096_s24, 0 }
  0x6a   : > { %1402 = dma.hbm_to_vmem [thread:$0]  (!%p2106_p7), %s1866_s7, 128, %s229_s20, %s1815_s11  }
  0x6b   : > { %237 = sbr.rel (%p2107_p3) target bundleno = 1680 (0x690), region = 32  ;;  %s1916_s8 = sshll.u32 (!%p2107_p3), %s1913_s21, 3 }
  0x6c   : > { %s240_s26 = scalar_lea.sflag (!%p2107_p3), [#allocation6], %s1913_s21  ;;  %s243_s16 = scalar_lea.vmem (!%p2107_p3), [#allocation5], %s1916_s8 }
  0x72   : > { %1644 = dma.done.wait (%p2108_p0), %s240_s26, 128  }
  0x73   : > { %1646 = vsyncadd (%p2108_p0), %s240_s26, 4294967168  ;;  %s248_s4 = sand.u32 1, %s1752_s18   ;;  %s252_s19 = scalar_lea.vmem [#allocation8], %s1916_s8 }
  0x74   : > { %s249_s11 = scalar_lea.sflag [#allocation9], %s248_s4 }
  0x75   : > { %1648 = dma.done.wait (%p2108_p0), %s249_s11, 256  }
  0x76   : > { %1650 = vsyncadd (%p2108_p0), %s249_s11, 4294967040  ;;  %vm307_vm0 = vcmask 64512   ;;  %v1682_v0 = vmov 0.0   ;;  %vm1683_vm1 = vmmov 0   ;;  %v313_v1 = vld [vmem:[%s252_s19] sm:$0xff]  ;;  %s1684_s18 = smov 96  }
  0x77   : > { %1345 = vmatprep.subr.mxu0 %v1682_v0  ;;  %308 = vst.msk [vmem:[#allocation4] sm:$0xff] %vm307_vm0, %v1682_v0  ;;  %309 = vst.msk [vmem:[#allocation4 + $0x8] sm:$0xff] %vm307_vm0, %v1682_v0  ;;  %1347 = vmatprep.mubr.msk.f32.mxu0 %vm1683_vm1, %v1682_v0  ;;  %v312_v3 = vld [vmem:[%s243_s16] sm:$0xff]  ;;  %vm298_vm2 = vcmask 7168   ;;  %v1685_v4 = vmov -inf   ;;  %v1686_v9 = vmov 0  }
  0x78   : > { %310 = vst.msk [vmem:[#allocation4 + $0x10] sm:$0xff] %vm307_vm0, %v1682_v0  ;;  %311 = vst.msk [vmem:[#allocation4 + $0x18] sm:$0xff] %vm307_vm0, %v1682_v0  ;;  %1350 = vmatprep.subr.mxu1 %v1682_v0  ;;  %1352 = vmatprep.mubr.msk.f32.mxu1 %vm1683_vm1, %v1682_v0  ;;  %s261_s24 = scalar_lea.vmem [#allocation10], %s1916_s8  ;;  %s1687_s7 = smov 64   ;;  %vm1149_vm3 = vcmask 130048   ;;  %vm1151_vm4 = vcmask 195584  }
  0x79   : > { %316 = vrot.lane.b32.xlu0 %v313_v1, %s1684_s18  ;;  %299 = vst.msk [vmem:[#allocation2] sm:$0xff] %vm298_vm2, %v1685_v4  ;;  %300 = vst.msk [vmem:[#allocation2 + $0x8] sm:$0xff] %vm298_vm2, %v1685_v4  ;;  %1475 = vset.pattern.permute.xlu1 %v1686_v9  ;;  %v1973_v14 = vld [vmem:[%s261_s24] sm:$0xff]  ;;  %s1688_s20 = smov 88   ;;  %s1689_s10 = smov 120   ;;  %vm1153_vm5 = vcmask 261120  }
  0x7a   : > { %301 = vst.msk [vmem:[#allocation2 + $0x10] sm:$0xff] %vm298_vm2, %v1685_v4  ;;  %302 = vst.msk [vmem:[#allocation2 + $0x18] sm:$0xff] %vm298_vm2, %v1685_v4  ;;  %1476 = vset.pattern.permute.xlu0 %v1686_v9  ;;  %s1690_s6 = smov 80   ;;  %s1691_s9 = smov 112  }
  0x7b   : > { %303 = vst.msk [vmem:[#allocation3] sm:$0xff] %vm298_vm2, %v1682_v0  ;;  %304 = vst.msk [vmem:[#allocation3 + $0x8] sm:$0xff] %vm298_vm2, %v1682_v0  ;;  %s1692_s22 = smov 72   ;;  %s1693_s28 = smov 104  }
  0x7c   : > { %305 = vst.msk [vmem:[#allocation3 + $0x10] sm:$0xff] %vm298_vm2, %v1682_v0  ;;  %306 = vst.msk [vmem:[#allocation3 + $0x18] sm:$0xff] %vm298_vm2, %v1682_v0  ;;  %s1694_s30 = smov 56   ;;  %s1695_s1 = smov 40  }
  0x7d   : > { %s1696_s29 = smov 48   ;;  %s1697_s5 = smov 8  }
  0x7e   : > { %s1698_s23 = smov 16   ;;  %s1699_s26 = smov 24  }
  0x7f   : > { %s1326_s16 = sshll.u32 %s1669_s15, 7  ;;  %s293_s4 = scalar_lea.vmem [#allocation11], %s1916_s8 }
  0x80   : > { %v1962_v10 = vld [vmem:[#allocation2] sm:$0xff]  ;;  %v591_v40 = vld [vmem:[#allocation2 + $0x8] sm:$0xff]  ;;  %s1170_s11 = sshll.u32 %s293_s4, 4  ;;  %s2034_s24 = scalar_lea.hbm %s2086_s3, %s1326_s16  ;;  %s2036_s11 = int_to_ptr.vmem [resolvable:$true] %s1170_s11 }
  0x81   : > { %v788_v43 = vld [vmem:[#allocation2 + $0x10] sm:$0xff]  ;;  %v985_v48 = vld [vmem:[#allocation2 + $0x18] sm:$0xff]  ;;  %s1156_s15 = scalar_lea.sflag [#allocation7], %s1913_s21  ;;  %s1591_s8 = scalar_lea.vmem %s2036_s11, 128 }
  0x82   : > { %p1592_p4 = scmp.ne.s32.totalorder %s2036_s11, %s1591_s8  ;;  %p2109_p10 = scmp.ne.s32.totalorder %s2097_s25, 0 }
  0x84   : > { %p1593_p12 = pnand %p1592_p4, %p2109_p10 }
  0x86   : > { %p1594_p1 = pneg %p1593_p12 }
  0xeb   : > { %v317_v2 = vpop.permute.xlu0 %316 }
  0xec   : > { %1346 = vmatpush3.xpose.msk.msra.mxu0 %vm307_vm0, %v317_v2 }
  0xed   : > { %1360 = vmatprep.subr.mxu0 %v1682_v0 }
  0xef   : > { %1348 = vmatmul.mubr.msk.f32.vlgmr.msra.gmra.mrb[0].mxu0 %vm307_vm0, %v312_v3 }
  0xf0   : > { %1362 = vmatprep.mubr.msk.f32.mxu0 %vm1683_vm1, %v1682_v0 }
 0x1c2   : > { %v390_v5 = vpop.f32.mrb[0].mxu0 }
 0x1c3   : > { %v394_v6 = vmul.f32 0.35355338, %v390_v5  ;;  %v1349_v7 = vpop.f32.mrb[1].mxu0 }
 0x1c5   : > { %v396_v8 = vsel %vm307_vm0, %v394_v6, -inf }
 0x1c6   : > { %397 = vmax.xlane.f32.xlu0 %v396_v8 }
 0x253   : > { %v398_v11 = vpop.xlane.xlu0 %397 }
 0x254   : > { %v1965_v12 = vmax.f32 %v1962_v10, %v398_v11 }
 0x256   : > { %v400_v13 = vsub.f32 %v1962_v10, %v1965_v12  ;;  %505 = vst.msk [vmem:[#allocation2] sm:$0xff] %vm298_vm2, %v1965_v12  ;;  %405 = vperm.xlu1 %1475, %v1965_v12  }
 0x258   : > { %v401_v8 = vmul.f32 1.442695, %v400_v13  ;;  %v608_v13 = vld [vmem:[#allocation3 + $0x8] sm:$0xff] }
 0x25a   : > { %427 = vrot.lane.b32.xlu1 %v1973_v14, %s1687_s7  ;;  %s1700_s7 = smov [#allocation11]  }
 0x25e   : > { %513 = vrot.lane.b32.xlu1 %v313_v1, %s1688_s20  ;;  %s1595_s20 = sshll.u32 %s1700_s7, 4  ;;  %s1596_s20 = int_to_ptr.vmem [resolvable:$false] %s1595_s20 }
 0x25f   : > { %p1598_p8 = scmp.lt.s32.totalorder %s2036_s11, %s1596_s20 }
 0x262   : > { %510 = vrot.lane.b32.xlu1 %v312_v3, %s1689_s10  ;;  %s1597_s10 = scalar_lea.vmem %s1596_s20, 256 }
 0x263   : > { %p1599_p9 = scmp.lt.s32.totalorder %s1597_s10, %s1591_s8 }
 0x265   : > { %p1600_p6 = por %p1599_p9, %p1598_p8 }
 0x266   : > { %710 = vrot.lane.b32.xlu1 %v313_v1, %s1690_s6 }
 0x267   : > { %p1601_p13 = pnand %p1600_p6, %p1594_p1 }
 0x26a   : > { %707 = vrot.lane.b32.xlu1 %v312_v3, %s1691_s9 }
 0x26e   : > { %907 = vrot.lane.b32.xlu1 %v313_v1, %s1692_s22 }
 0x272   : > { %904 = vrot.lane.b32.xlu1 %v312_v3, %s1693_s28 }
 0x2d5   : > { %v406_v15 = vpop.permute.xlu1 %405 }
 0x2d6   : > { %v408_v16 = vsub.f32 %v394_v6, %v406_v15 }
 0x2d8   : > { %v409_v17 = vmul.f32 1.442695, %v408_v16 }
 0x2d9   : > { %v428_v18 = vpop.permute.xlu1 %427 }
 0x2da   : > { %1477 = vpow2.f32 %v409_v17  ;;  %1351 = vmatpush3.msra.mxu1 %v428_v18  ;;  %v411_v18 = vld [vmem:[#allocation3] sm:$0xff] }
 0x2db   : > { %1355 = vmatprep.subr.mxu1 %v1682_v0 }
 0x2dd   : > { %v514_v19 = vpop.permute.xlu1 %513 }
 0x2e1   : > { %v511_v20 = vpop.permute.xlu1 %510 }
 0x2e4   : > { %v1478_v21 = vpop.eup %1477 }
 0x2e5   : > { %1353 = vmatmul.mubr.msk.f32.vlgmr.msra.gmra.mrb[0].mxu1 %vm307_vm0, %v1478_v21  ;;  %v711_v22 = vpop.permute.xlu1 %710  ;;  %v413_v52 = vsel %vm307_vm0, %v1478_v21, 0.0 }
 0x2e6   : > { %1356 = vmatpush3.xpose.msk.msra.mxu1 %vm307_vm0, %v514_v19  ;;  %1357 = vmatprep.mubr.msk.f32.mxu1 %vm1683_vm1, %v1682_v0 }
 0x2e7   : > { %1365 = vmatprep.subr.mxu1 %v1682_v0 }
 0x2e9   : > { %1358 = vmatmul.mubr.msk.f32.vlgmr.msra.gmra.mrb[2].mxu1 %vm307_vm0, %v511_v20  ;;  %v708_v23 = vpop.permute.xlu1 %707 }
 0x2ea   : > { %1366 = vmatpush3.xpose.msk.msra.mxu1 %vm307_vm0, %v711_v22  ;;  %1367 = vmatprep.mubr.msk.f32.mxu1 %vm1683_vm1, %v1682_v0 }
 0x2eb   : > { %1375 = vmatprep.subr.mxu1 %v1682_v0 }
 0x2ed   : > { %1368 = vmatmul.mubr.msk.f32.vlgmr.msra.gmra.mrb[4].mxu1 %vm307_vm0, %v708_v23  ;;  %v908_v24 = vpop.permute.xlu1 %907  ;;  %v805_v23 = vld [vmem:[#allocation3 + $0x10] sm:$0xff] }
 0x2ee   : > { %1376 = vmatpush3.xpose.msk.msra.mxu1 %vm307_vm0, %v908_v24  ;;  %1377 = vmatprep.mubr.msk.f32.mxu1 %vm1683_vm1, %v1682_v0 }
 0x2f1   : > { %v905_v25 = vpop.permute.xlu1 %904 }
 0x2f2   : > { %1378 = vmatmul.mubr.msk.f32.vlgmr.msra.gmra.mrb[6].mxu1 %vm307_vm0, %v905_v25 }
 0x3b8   : > { %v1992_v26 = vpop.f32.mrb[0].mxu1 }
 0x3b9   : > { %v1354_v27 = vpop.f32.mrb[1].mxu1 }
 0x3bc   : > { %v585_v28 = vpop.f32.mrb[2].mxu1 }
 0x3bd   : > { %v589_v29 = vmul.f32 0.35355338, %v585_v28  ;;  %v1359_v30 = vpop.f32.mrb[3].mxu1 }
 0x3bf   : > { %v592_v31 = vsel %vm307_vm0, %v589_v29, -inf }
 0x3c0   : > { %593 = vmax.xlane.f32.xlu1 %v592_v31  ;;  %v782_v32 = vpop.f32.mrb[4].mxu1 }
 0x3c1   : > { %v786_v33 = vmul.f32 0.35355338, %v782_v32  ;;  %v1369_v34 = vpop.f32.mrb[5].mxu1 }
 0x3c2   : > { %v419_v34 = vld [vmem:[#allocation4] sm:$0xff] }
 0x3c3   : > { %v789_v35 = vsel %vm307_vm0, %v786_v33, -inf }
 0x3c4   : > { %790 = vmax.xlane.f32.xlu0 %v789_v35 }
 0x3c5   : > { %v979_v36 = vpop.f32.mrb[6].mxu1 }
 0x3c6   : > { %v983_v37 = vmul.f32 0.35355338, %v979_v36  ;;  %v1379_v38 = vpop.f32.mrb[7].mxu1 }
 0x3c8   : > { %v986_v39 = vsel %vm307_vm0, %v983_v37, -inf }
 0x3c9   : > { %987 = vmax.xlane.f32.xlu0 %v986_v39 }
 0x44d   : > { %v594_v41 = vpop.xlane.xlu1 %593 }
 0x44e   : > { %v595_v42 = vmax.f32 %v591_v40, %v594_v41  ;;  %v616_v41 = vld [vmem:[#allocation4 + $0x8] sm:$0xff] }
 0x450   : > { %v596_v44 = vsub.f32 %v591_v40, %v595_v42  ;;  %702 = vst.msk [vmem:[#allocation2 + $0x8] sm:$0xff] %vm298_vm2, %v595_v42  ;;  %601 = vperm.xlu0 %1476, %v595_v42  }
 0x451   : > { %v791_v45 = vpop.xlane.xlu0 %790 }
 0x452   : > { %v792_v46 = vmax.f32 %v788_v43, %v791_v45  ;;  %v597_v9 = vmul.f32 1.442695, %v596_v44 }
 0x454   : > { %v793_v47 = vsub.f32 %v788_v43, %v792_v46  ;;  %899 = vst.msk [vmem:[#allocation2 + $0x10] sm:$0xff] %vm298_vm2, %v792_v46  ;;  %798 = vperm.xlu1 %1475, %v792_v46   ;;  %624 = vrot.lane.b32.xlu0 %v1973_v14, %s1694_s30  ;;  %v813_v43 = vld [vmem:[#allocation4 + $0x10] sm:$0xff] }
 0x456   : > { %v988_v49 = vpop.xlane.xlu0 %987  ;;  %v794_v11 = vmul.f32 1.442695, %v793_v47 }
 0x457   : > { %v989_v50 = vmax.f32 %v985_v48, %v988_v49 }
 0x458   : > { %1018 = vrot.lane.b32.xlu0 %v1973_v14, %s1695_s1 }
 0x459   : > { %v990_v51 = vsub.f32 %v985_v48, %v989_v50  ;;  %1096 = vst.msk [vmem:[#allocation2 + $0x18] sm:$0xff] %vm298_vm2, %v989_v50  ;;  %995 = vperm.xlu1 %1475, %v989_v50   ;;  %v1010_v50 = vld [vmem:[#allocation4 + $0x18] sm:$0xff] }
 0x45d   : > { %821 = vrot.lane.b32.xlu1 %v1973_v14, %s1696_s29  ;;  %v991_v14 = vmul.f32 1.442695, %v990_v51 }
 0x481   : > { %414 = vadd.xlane.f32.xlu1 %v413_v52 }
 0x4cf   : > { %v602_v53 = vpop.permute.xlu0 %601 }
 0x4d0   : > { %v604_v54 = vsub.f32 %v589_v29, %v602_v53  ;;  %v1002_v29 = vld [vmem:[#allocation3 + $0x18] sm:$0xff] }
 0x4d2   : > { %v605_v55 = vmul.f32 1.442695, %v604_v54 }
 0x4d3   : > { %v799_v56 = vpop.permute.xlu1 %798  ;;  %v625_v57 = vpop.permute.xlu0 %624 }
 0x4d4   : > { %1479 = vpow2.f32 %v605_v55  ;;  %v801_v58 = vsub.f32 %v786_v33, %v799_v56  ;;  %1361 = vmatpush3.msra.mxu0 %v625_v57 }
 0x4d5   : > { %1370 = vmatprep.subr.mxu0 %v1682_v0 }
 0x4d6   : > { %v802_v59 = vmul.f32 1.442695, %v801_v58 }
 0x4d7   : > { %v1019_v3 = vpop.permute.xlu0 %1018 }
 0x4d8   : > { %1481 = vpow2.f32 %v802_v59  ;;  %v996_v60 = vpop.permute.xlu1 %995 }
 0x4d9   : > { %v998_v61 = vsub.f32 %v983_v37, %v996_v60 }
 0x4db   : > { %v999_v62 = vmul.f32 1.442695, %v998_v61 }
 0x4dc   : > { %v822_v63 = vpop.permute.xlu1 %821 }
 0x4dd   : > { %1483 = vpow2.f32 %v999_v62 }
 0x4de   : > { %v1480_v1 = vpop.eup %1479  ;;  %1485 = vpow2.f32 %v401_v8 }
 0x4df   : > { %1363 = vmatmul.mubr.msk.f32.vlgmr.msra.gmra.mrb[2].mxu0 %vm307_vm0, %v1480_v1  ;;  %v610_v2 = vsel %vm307_vm0, %v1480_v1, 0.0  ;;  %1487 = vpow2.f32 %v597_v9 }
 0x4e0   : > { %611 = vadd.xlane.f32.xlu0 %v610_v2  ;;  %1371 = vmatpush3.msra.mxu0 %v822_v63  ;;  %1489 = vpow2.f32 %v794_v11 }
 0x4e1   : > { %1372 = vmatprep.mubr.msk.f32.mxu0 %vm1683_vm1, %v1682_v0  ;;  %1380 = vmatprep.subr.mxu0 %v1682_v0  ;;  %1491 = vpow2.f32 %v991_v14 }
 0x4e2   : > { %v1482_v4 = vpop.eup %1481 }
 0x4e3   : > { %1373 = vmatmul.mubr.msk.f32.vlgmr.msra.gmra.mrb[4].mxu0 %vm307_vm0, %v1482_v4  ;;  %v807_v5 = vsel %vm307_vm0, %v1482_v4, 0.0 }
 0x4e4   : > { %808 = vadd.xlane.f32.xlu0 %v807_v5  ;;  %1381 = vmatpush3.msra.mxu0 %v1019_v3 }
 0x4e5   : > { %1382 = vmatprep.mubr.msk.f32.mxu0 %vm1683_vm1, %v1682_v0 }
 0x4e7   : > { %v1484_v6 = vpop.eup %1483 }
 0x4e8   : > { %1383 = vmatmul.mubr.msk.f32.vlgmr.msra.gmra.mrb[6].mxu0 %vm307_vm0, %v1484_v6  ;;  %v1004_v7 = vsel %vm307_vm0, %v1484_v6, 0.0  ;;  %v1486_v15 = vpop.eup %1485 }
 0x4e9   : > { %1005 = vadd.xlane.f32.xlu1 %v1004_v7  ;;  %v1488_v16 = vpop.eup %1487  ;;  %v412_v19 = vmul.f32 %v1486_v15, %v411_v18 }
 0x4ea   : > { %v1490_v0 = vpop.eup %1489  ;;  %v609_v21 = vmul.f32 %v1488_v16, %v608_v13 }
 0x4eb   : > { %v1492_v17 = vpop.eup %1491  ;;  %v806_v25 = vmul.f32 %v1490_v0, %v805_v23 }
 0x4ec   : > { %v1003_v30 = vmul.f32 %v1492_v17, %v1002_v29 }
 0x4fa   : > { %619 = vperm.xlu1 %1475, %v1488_v16   ;;  %422 = vperm.xlu0 %1476, %v1486_v15  }
 0x4fe   : > { %816 = vperm.xlu1 %1475, %v1490_v0   ;;  %1013 = vperm.xlu0 %1476, %v1492_v17  }
 0x50e   : > { %v415_v20 = vpop.xlane.xlu1 %414 }
 0x50f   : > { %v416_v10 = vadd.f32 %v415_v20, %v412_v19 }
 0x511   : > { %418 = vst.msk [vmem:[#allocation3] sm:$0xff] %vm298_vm2, %v416_v10 }
 0x518   : > { %v1101_v12 = vld [vmem:[#allocation3] sm:$0xff] }
 0x519   : > { %1104 = vperm.xlu1 %1475, %v1101_v12  }
 0x56d   : > { %v612_v22 = vpop.xlane.xlu0 %611 }
 0x56e   : > { %v613_v24 = vadd.f32 %v612_v22, %v609_v21 }
 0x570   : > { %614 = vst.msk [vmem:[#allocation3 + $0x8] sm:$0xff] %vm298_vm2, %v613_v24 }
 0x571   : > { %v809_v27 = vpop.xlane.xlu0 %808 }
 0x572   : > { %v810_v28 = vadd.f32 %v809_v27, %v806_v25 }
 0x574   : > { %811 = vst.msk [vmem:[#allocation3 + $0x10] sm:$0xff] %vm298_vm2, %v810_v28 }
 0x576   : > { %v1006_v31 = vpop.xlane.xlu1 %1005 }
 0x577   : > { %v1007_v32 = vadd.f32 %v1006_v31, %v1003_v30  ;;  %v1110_v33 = vld [vmem:[#allocation3 + $0x8] sm:$0xff] }
 0x578   : > { %1113 = vperm.xlu0 %1476, %v1110_v33  }
 0x579   : > { %1008 = vst.msk [vmem:[#allocation3 + $0x18] sm:$0xff] %vm298_vm2, %v1007_v32  ;;  %v423_v35 = vpop.permute.xlu0 %422 }
 0x57a   : > { %v425_v36 = vmul.f32 %v423_v35, %v419_v34  ;;  %v620_v40 = vpop.permute.xlu1 %619 }
 0x57b   : > { %v1119_v37 = vld [vmem:[#allocation3 + $0x10] sm:$0xff]  ;;  %v622_v42 = vmul.f32 %v620_v40, %v616_v41 }
 0x57c   : > { %v503_v38 = vadd.f32 %v1992_v26, %v425_v36  ;;  %1122 = vperm.xlu1 %1475, %v1119_v37  }
 0x57d   : > { %v1014_v51 = vpop.permute.xlu0 %1013 }
 0x57e   : > { %504 = vst.msk [vmem:[#allocation4] sm:$0xff] %vm307_vm0, %v503_v38  ;;  %v817_v44 = vpop.permute.xlu1 %816  ;;  %v1016_v53 = vmul.f32 %v1014_v51, %v1010_v50 }
 0x57f   : > { %v819_v48 = vmul.f32 %v817_v44, %v813_v43 }
 0x580   : > { %v1128_v39 = vld [vmem:[#allocation3 + $0x18] sm:$0xff] }
 0x581   : > { %1131 = vperm.xlu0 %1476, %v1128_v39  }
 0x585   : > { %v1100_v8 = vld [vmem:[#allocation4] sm:$0xff] }
 0x598   : > { %v1105_v57 = vpop.permute.xlu1 %1104 }
 0x5b2   : > { %v696_v45 = vpop.f32.mrb[2].mxu0 }
 0x5b3   : > { %v700_v46 = vadd.f32 %v696_v45, %v622_v42  ;;  %v1364_v47 = vpop.f32.mrb[3].mxu0 }
 0x5b5   : > { %701 = vst.msk [vmem:[#allocation4 + $0x8] sm:$0xff] %vm307_vm0, %v700_v46 }
 0x5b6   : > { %v893_v49 = vpop.f32.mrb[4].mxu0 }
 0x5b7   : > { %v897_v26 = vadd.f32 %v893_v49, %v819_v48  ;;  %v1374_v52 = vpop.f32.mrb[5].mxu0 }
 0x5b9   : > { %898 = vst.msk [vmem:[#allocation4 + $0x10] sm:$0xff] %vm307_vm0, %v897_v26 }
 0x5bb   : > { %v1090_v54 = vpop.f32.mrb[6].mxu0 }
 0x5bc   : > { %v1094_v55 = vadd.f32 %v1090_v54, %v1016_v53  ;;  %v1384_v56 = vpop.f32.mrb[7].mxu0  ;;  %v1109_v62 = vld [vmem:[#allocation4 + $0x8] sm:$0xff] }
 0x5be   : > { %1095 = vst.msk [vmem:[#allocation4 + $0x18] sm:$0xff] %vm307_vm0, %v1094_v55 }
 0x5c0   : > { %v1118_v2 = vld [vmem:[#allocation4 + $0x10] sm:$0xff] }
 0x5c5   : > { %v1127_v5 = vld [vmem:[#allocation4 + $0x18] sm:$0xff] }
 0x5f7   : > { %v1114_v58 = vpop.permute.xlu0 %1113 }
 0x5f8   : > { %1493 = vrcp.f32 %v1114_v58 }
 0x5fb   : > { %v1123_v59 = vpop.permute.xlu1 %1122 }
 0x5fc   : > { %1495 = vrcp.f32 %v1123_v59 }
 0x600   : > { %v1132_v60 = vpop.permute.xlu0 %1131 }
 0x601   : > { %1497 = vrcp.f32 %v1132_v60 }
 0x602   : > { %v1494_v61 = vpop.eup %1493  ;;  %1499 = vrcp.f32 %v1105_v57 }
 0x603   : > { %v1117_v63 = vmul.f32 %v1494_v61, %v1109_v62 }
 0x605   : > { %1137 = vrot.lane.b32.xlu1 %v1117_v63, %s1697_s5 }
 0x606   : > { %v1496_v1 = vpop.eup %1495 }
 0x607   : > { %v1126_v3 = vmul.f32 %v1496_v1, %v1118_v2 }
 0x609   : > { %1141 = vrot.lane.b32.xlu0 %v1126_v3, %s1698_s23 }
 0x60b   : > { %v1498_v4 = vpop.eup %1497 }
 0x60c   : > { %v1135_v6 = vmul.f32 %v1498_v4, %v1127_v5  ;;  %v1500_v7 = vpop.eup %1499 }
 0x60d   : > { %v1108_v11 = vmul.f32 %v1500_v7, %v1100_v8 }
 0x60e   : > { %1145 = vrot.lane.b32.xlu1 %v1135_v6, %s1699_s26 }
 0x677   : > { %v1138_v9 = vpop.permute.xlu1 %1137 }
 0x678   : > { %v1148_v15 = vsel %vm307_vm0, %v1108_v11, %v1138_v9 }
 0x67b   : > { %v1142_v14 = vpop.permute.xlu0 %1141 }
 0x67c   : > { %v1150_v16 = vsel %vm1149_vm3, %v1148_v15, %v1142_v14 }
 0x680   : > { %v1146_v0 = vpop.permute.xlu1 %1145 }
 0x681   : > { %v1152_v17 = vsel %vm1151_vm4, %v1150_v16, %v1146_v0 }
 0x682   : > { %1154 = vst.msk [vmem:[%s293_s4] sm:$0xff] %vm1153_vm5, %v1152_v17 }
 0x683   : > { %1604 = shalt.err (!%p1601_p13)
}
 0x684   : > { %s1605_s21 = scalar_lea.hbm %s2034_s24, 128  ;;  %s1609_s22 = scalar_lea.hbm %s2086_s3, 256 }
 0x685   : > { %p1606_p11 = scmp.ne.s32.totalorder %s2034_s24, %s1605_s21  ;;  %p1610_p7 = scmp.lt.u32.totalorder %s2034_s24, %s2086_s3 }
 0x686   : > { %p1611_p3 = scmp.lt.u32.totalorder %s1609_s22, %s1605_s21  ;;  %p1613_p4 = scmp.lt.u32.totalorder %s1605_s21, %s2034_s24 }
 0x687   : > { %p1607_p2 = pnand %p1606_p11, %p2109_p10 }
 0x688   : > { %p1612_p0 = por %p1611_p3, %p1610_p7 }
 0x689   : > { %p1608_p5 = pneg %p1607_p2 }
 0x68a   : > { %p1614_p12 = por %p1613_p4, %p1612_p0 }
 0x68c   : > { %p1615_p1 = pnand %p1614_p12, %p1608_p5 }
 0x68e   : > { %1618 = shalt.err (!%p1615_p1)
}
 0x68f   : > { %1391 = dma.vmem_to_hbm [thread:$0]  (%p2109_p10), %s2036_s11, 128, %s2034_s24, %s1156_s15  }
 0x690 PF: > { %s1182_s1 = sand.u32 1, %s1657_s12   ;;  %p2110_p8 = scmp.ne.s32.totalorder %s2099_s27, 0 }
 0x691   : > { %p2111_p9 = scmp.ge.s32.totalorder %s1677_s17, 2  ;;  %s1183_s29 = scalar_lea.sflag [#allocation7], %s1182_s1 }
 0x693   : > { %p1404_p6 = pnand %p2111_p9, %p2110_p8 }
 0x695   : > { %1652 = dma.done.wait (!%p1404_p6), %s1183_s29, 128  }
 0x696   : > { %1654 = vsyncadd (!%p1404_p6), %s1183_s29, 4294967168  ;;  %s22_s17 = sadd.s32 1, %s1677_s17   ;;  %s2112_s25 = sld [smem:[#allocation17_spill]] }
 0x697   : > { %p19_p13 = scmp.ge.s32.totalorder %s22_s17, 4   ;;  %s2113_s15 = sld [smem:[#allocation15_spill]] }
 0x698   : > { %s2114_s16 = sld [smem:[#allocation16_spill]]  ;;  %s2115_s12 = smov %s1661_s13 }
 0x699   : > { %s2116_s13 = smov %s1665_s14  ;;  %21 = sbr.rel (!%p19_p13) target bundleno = 10 (0xa), region = 118 }
 0x69c   : > { %s2117_s14 = smov %s2112_s25 }
 0x6a0   :  { %1188 = vsyncpa [#allocation6], 1 }
 0x6a1   :  { %1190 = vsyncpa [#allocation6 + $0x1], 1 }
 0x6a2   :  { %1191 = vsyncpa [#allocation9], 1 }
 0x6a3   :  { %1193 = vsyncpa [#allocation9 + $0x1], 1 }
 0x6a4   :  { %1194 = vsyncpa [#allocation7], 1 }
 0x6a5   :  { %1196 = vsyncpa [#allocation7 + $0x1], 1 }

</bundles_post_ra>
